<compile_context>
chip_gen: v6e
topology: v6e:2x2x1
jax: 0.10.0
libtpu: 0.0.40
codegen_flags: <defaults>
</compile_context>

<pallas_src>
import functools

import jax
import jax.numpy as jnp
from jax.experimental import pallas as pl
from jax.experimental.pallas import tpu as pltpu


def _round_up(x, m):
    return ((x + m - 1) // m) * m


# ----------------------------------------------------------------------------
# Fused forward kernel: init_net -> linear1+ReLU -> L x LSTM -> linear2
# All weights are pre-transposed to (K, N); biases are (1, N) row vectors.
# Gate order follows PyTorch: i, f, g, o.
# ----------------------------------------------------------------------------
def _fused_forward_kernel(
    x_ref,                      # (T*Bp, n_input)  padded seq, row = t*Bp + b
    xinit_ref,                  # (Bp, n_init)
    iw1_ref, ib1_ref,           # (n_init, H), (1, H)
    iw2_ref, ib2_ref,           # (H, L*H), (1, L*H)
    iw3_ref, ib3_ref,           # (L*H, 2*L*H), (1, 2*L*H)
    l1w_ref, l1b_ref,           # (n_input, H), (1, H)
    wih_ref,                    # (L, H, 4H)
    whh_ref,                    # (L, H, 4H)
    blstm_ref,                  # (L, 1, 4H)  (b_ih + b_hh)
    l2w_ref, l2b_ref,           # (H, n_out), (1, n_out)
    out_ref,                    # (T*Bp, n_out)
    seq_scr,                    # VMEM (T*Bp, H)   current layer's sequence
    xproj_scr,                  # VMEM (T*Bp, 4H)  hoisted input projection
    *, T, Bp, H, L):
    f32 = jnp.float32

    # ---- init_net: x_init -> packed (h0, c0) as (Bp, 2*L*H) ----------------
    h1 = jnp.dot(xinit_ref[...], iw1_ref[...], preferred_element_type=f32) + ib1_ref[...]
    h1 = jnp.maximum(h1, 0.0)
    h2 = jnp.dot(h1, iw2_ref[...], preferred_element_type=f32) + ib2_ref[...]
    h2 = jnp.maximum(h2, 0.0)
    hc = jnp.dot(h2, iw3_ref[...], preferred_element_type=f32) + ib3_ref[...]

    # ---- linear1 + ReLU on the whole padded sequence (dropout = identity) --
    seq_scr[...] = jnp.maximum(
        jnp.dot(x_ref[...], l1w_ref[...], preferred_element_type=f32)
        + l1b_ref[...], 0.0)

    # ---- stacked LSTM layers ------------------------------------------------
    for l in range(L):                         # static Python loop over layers
        w_hh = whh_ref[l]                      # (H, 4H), loaded once per layer
        # Hoisted input projection for the whole sequence (+ fused bias): one
        # big (T*Bp, H) x (H, 4H) matmul instead of T tiny ones.
        xproj_scr[...] = (
            jnp.dot(seq_scr[...], wih_ref[l], preferred_element_type=f32)
            + blstm_ref[l])

        h0 = hc[:, l * H:(l + 1) * H]          # (Bp, H)
        c0 = hc[:, (L + l) * H:(L + l + 1) * H]

        def step(t, carry):
            h_prev, c_prev = carry
            row = pl.multiple_of(t * Bp, 8)    # Bp multiple of 8 -> aligned
            gates = xproj_scr[pl.ds(row, Bp), :] + jnp.dot(
                h_prev, w_hh, preferred_element_type=f32)        # (Bp, 4H)
            i_g = jax.nn.sigmoid(gates[:, 0 * H:1 * H])
            f_g = jax.nn.sigmoid(gates[:, 1 * H:2 * H])
            g_g = jnp.tanh(gates[:, 2 * H:3 * H])
            o_g = jax.nn.sigmoid(gates[:, 3 * H:4 * H])
            c_new = f_g * c_prev + i_g * g_g
            h_new = o_g * jnp.tanh(c_new)
            seq_scr[pl.ds(row, Bp), :] = h_new
            return (h_new, c_new)

        jax.lax.fori_loop(0, T, step, (h0, c0), unroll=T <= 16)

    # ---- linear2 ------------------------------------------------------------
    out_ref[...] = (jnp.dot(seq_scr[...], l2w_ref[...],
                            preferred_element_type=f32) + l2b_ref[...])


# ----------------------------------------------------------------------------
# Host wrapper: padding, weight pre-transposition, single pallas_call.
# ----------------------------------------------------------------------------
def rnn_with_init_forward(params, seqs, x_init, lengths,
                          n_hidden, n_rnn_layer, n_output):
    T = int(max(lengths))
    B = len(seqs)
    n_input = int(seqs[0].shape[1])
    n_init = int(x_init.shape[1])
    H, L = n_hidden, n_rnn_layer
    Bp = max(8, _round_up(B, 8))           # pad batch to a sublane multiple
    f32 = jnp.float32

    # pad_sequence (time-major) + batch padding, flattened to (T*Bp, n_input)
    x_pad = jnp.zeros((T, Bp, n_input), f32)
    for i, s in enumerate(seqs):
        x_pad = x_pad.at[:lengths[i], i].set(s.astype(f32))
    x_flat = x_pad.reshape(T * Bp, n_input)

    xinit_p = jnp.zeros((Bp, n_init), f32).at[:B].set(x_init.astype(f32))

    def t2(w):     # PyTorch (out, in) -> (in, out): kernels never transpose
        return jnp.asarray(w, f32).T

    def rv(b):     # bias -> (1, N) row vector (broadcast once per big matmul)
        return jnp.asarray(b, f32).reshape(1, -1)

    w_ih_t = jnp.stack([t2(params[f"w_ih_{l}"]) for l in range(L)])   # (L,H,4H)
    w_hh_t = jnp.stack([t2(params[f"w_hh_{l}"]) for l in range(L)])   # (L,H,4H)
    b_lstm = jnp.stack([rv(params[f"b_ih_{l}"] + params[f"b_hh_{l}"])
                        for l in range(L)])                            # (L,1,4H)

    iw1, ib1 = t2(params["init_w1"]), rv(params["init_b1"])
    iw2, ib2 = t2(params["init_w2"]), rv(params["init_b2"])
    iw3, ib3 = t2(params["init_w3"]), rv(params["init_b3"])
    l1w, l1b = t2(params["lin1_w"]), rv(params["lin1_b"])
    l2w, l2b = t2(params["lin2_w"]), rv(params["lin2_b"])

    def full(shape):
        return pl.BlockSpec(tuple(shape), lambda i, _n=len(shape): (0,) * _n)

    out_flat = pl.pallas_call(
        functools.partial(_fused_forward_kernel, T=T, Bp=Bp, H=H, L=L),
        out_shape=jax.ShapeDtypeStruct((T * Bp, n_output), f32),
        grid=(1,),
        in_specs=[
            full(x_flat.shape),
            full(xinit_p.shape),
            full(iw1.shape), full(ib1.shape),
            full(iw2.shape), full(ib2.shape),
            full(iw3.shape), full(ib3.shape),
            full(l1w.shape), full(l1b.shape),
            full(w_ih_t.shape), full(w_hh_t.shape), full(b_lstm.shape),
            full(l2w.shape), full(l2b.shape),
        ],
        out_specs=full((T * Bp, n_output)),
        scratch_shapes=[
            pltpu.VMEM((T * Bp, H), f32),
            pltpu.VMEM((T * Bp, 4 * H), f32),
        ],
        compiler_params=pltpu.CompilerParams(
            dimension_semantics=("arbitrary",)),
    )(x_flat, xinit_p, iw1, ib1, iw2, ib2, iw3, ib3, l1w, l1b,
      w_ih_t, w_hh_t, b_lstm, l2w, l2b)

    out = out_flat.reshape(T, Bp, n_output)[:, :B]
    # return list of per-sequence outputs (only valid timesteps)
    return [out[:lengths[i], i] for i in range(B)]


# ----------------------------------------------------------------------------
# Parameter construction (deterministic, PyTorch-like uniform init).
# ----------------------------------------------------------------------------
def init_params(key, n_input, n_output, n_hidden, n_init, n_rnn_layer):
    params = {}

    def uni(k, shape, fan_in):
        bound = 1.0 / jnp.sqrt(jnp.float32(fan_in))
        return jax.random.uniform(k, shape, jnp.float32, -bound, bound)

    keys = iter(jax.random.split(key, 64))
    nd = n_rnn_layer  # unidirectional

    # init_net: Linear(n_init, H) -> ReLU -> Linear(H, H*L) -> ReLU
    #           -> Linear(H*L, 2*nd*H)
    params["init_w1"] = uni(next(keys), (n_hidden, n_init), n_init)
    params["init_b1"] = uni(next(keys), (n_hidden,), n_init)
    params["init_w2"] = uni(next(keys), (n_hidden * n_rnn_layer, n_hidden), n_hidden)
    params["init_b2"] = uni(next(keys), (n_hidden * n_rnn_layer,), n_hidden)
    params["init_w3"] = uni(next(keys), (2 * nd * n_hidden, n_hidden * n_rnn_layer),
                            n_hidden * n_rnn_layer)
    params["init_b3"] = uni(next(keys), (2 * nd * n_hidden,), n_hidden * n_rnn_layer)

    # linear1 / linear2
    params["lin1_w"] = uni(next(keys), (n_hidden, n_input), n_input)
    params["lin1_b"] = uni(next(keys), (n_hidden,), n_input)
    params["lin2_w"] = uni(next(keys), (n_output, n_hidden), n_hidden)
    params["lin2_b"] = uni(next(keys), (n_output,), n_hidden)

    # LSTM layers (input size == n_hidden for every layer)
    for l in range(n_rnn_layer):
        params[f"w_ih_{l}"] = uni(next(keys), (4 * n_hidden, n_hidden), n_hidden)
        params[f"w_hh_{l}"] = uni(next(keys), (4 * n_hidden, n_hidden), n_hidden)
        params[f"b_ih_{l}"] = uni(next(keys), (4 * n_hidden,), n_hidden)
        params[f"b_hh_{l}"] = uni(next(keys), (4 * n_hidden,), n_hidden)
    return params


# ----------------------------------------------------------------------------
# Pure-JAX reference (for verification)
# ----------------------------------------------------------------------------
def _ref_dense(x, w, b, relu=False):
    y = jnp.dot(x, w.T, precision=jax.lax.Precision.HIGHEST) + b
    return jnp.maximum(y, 0.0) if relu else y


def _ref_lstm_layer(x, w_ih, w_hh, b_ih, b_hh, h0, c0):
    H = h0.shape[-1]

    def step(carry, x_t):
        h, c = carry
        gates = (jnp.dot(x_t, w_ih.T, precision=jax.lax.Precision.HIGHEST)
                 + jnp.dot(h, w_hh.T, precision=jax.lax.Precision.HIGHEST)
                 + b_ih + b_hh)
        i = jax.nn.sigmoid(gates[:, :H])
        f = jax.nn.sigmoid(gates[:, H:2 * H])
        g = jnp.tanh(gates[:, 2 * H:3 * H])
        o = jax.nn.sigmoid(gates[:, 3 * H:])
        c_new = f * c + i * g
        h_new = o * jnp.tanh(c_new)
        return (h_new, c_new), h_new

    _, ys = jax.lax.scan(step, (h0, c0), x)
    return ys


def ref_forward(params, seqs, x_init, lengths, n_hidden, n_rnn_layer, n_output):
    T, B = max(lengths), len(seqs)
    n_input = seqs[0].shape[1]
    x_pad = jnp.zeros((T, B, n_input), jnp.float32)
    for i, s in enumerate(seqs):
        x_pad = x_pad.at[:lengths[i], i].set(s)

    h1 = _ref_dense(x_init, params["init_w1"], params["init_b1"], True)
    h2 = _ref_dense(h1, params["init_w2"], params["init_b2"], True)
    h3 = _ref_dense(h2, params["init_w3"], params["init_b3"], False)
    hc = h3.reshape(B, 2, n_rnn_layer, n_hidden).transpose(1, 2, 0, 3)
    h0, c0 = hc[0], hc[1]

    y = _ref_dense(x_pad.reshape(T * B, n_input),
                   params["lin1_w"], params["lin1_b"], True).reshape(T, B, n_hidden)
    for l in range(n_rnn_layer):
        y = _ref_lstm_layer(y, params[f"w_ih_{l}"], params[f"w_hh_{l}"],
                            params[f"b_ih_{l}"], params[f"b_hh_{l}"],
                            h0[l], c0[l])
    out = _ref_dense(y.reshape(T * B, n_hidden),
                     params["lin2_w"], params["lin2_b"], False)
    out = out.reshape(T, B, n_output)
    return [out[:lengths[i], i] for i in range(B)]


# ----------------------------------------------------------------------------
if __name__ == "__main__":
    n_input, n_output, n_hidden, n_init, n_rnn_layer = 4, 3, 32, 5, 2
    lengths = [8, 6]
    B = len(lengths)

    key = jax.random.PRNGKey(0)
    k_params, k_x0, k_x1, k_init = jax.random.split(key, 4)

    params = init_params(k_params, n_input, n_output, n_hidden, n_init, n_rnn_layer)

    seqs = [
        jax.random.normal(k_x0, (lengths[0], n_input), jnp.float32),
        jax.random.normal(k_x1, (lengths[1], n_input), jnp.float32),
    ]
    x_init = jax.random.normal(k_init, (B, n_init), jnp.float32)

    outs = rnn_with_init_forward(params, seqs, x_init, lengths,
                                 n_hidden, n_rnn_layer, n_output)
    outs = [jax.block_until_ready(o) for o in outs]

    refs = ref_forward(params, seqs, x_init, lengths,
                       n_hidden, n_rnn_layer, n_output)

    for o, r, l in zip(outs, refs, lengths):
        assert o.shape == (l, n_output), (o.shape, l, n_output)
        assert jnp.allclose(o, r, atol=2e-3, rtol=2e-3), \
            float(jnp.max(jnp.abs(o - r)))

    print("KERNEL_OK")
</pallas_src>

<mosaic_0001>
module attributes {stable_mosaic.version = 11 : i64} {
  func.func @_fused_forward_kernel(%arg0: i32, %arg1: memref<64x4xf32, #tpu.memory_space<vmem>>, %arg2: memref<8x5xf32, #tpu.memory_space<vmem>>, %arg3: memref<5x32xf32, #tpu.memory_space<vmem>>, %arg4: memref<1x32xf32, #tpu.memory_space<vmem>>, %arg5: memref<32x64xf32, #tpu.memory_space<vmem>>, %arg6: memref<1x64xf32, #tpu.memory_space<vmem>>, %arg7: memref<64x128xf32, #tpu.memory_space<vmem>>, %arg8: memref<1x128xf32, #tpu.memory_space<vmem>>, %arg9: memref<4x32xf32, #tpu.memory_space<vmem>>, %arg10: memref<1x32xf32, #tpu.memory_space<vmem>>, %arg11: memref<2x32x128xf32, #tpu.memory_space<vmem>>, %arg12: memref<2x32x128xf32, #tpu.memory_space<vmem>>, %arg13: memref<2x1x128xf32, #tpu.memory_space<vmem>>, %arg14: memref<32x3xf32, #tpu.memory_space<vmem>>, %arg15: memref<1x3xf32, #tpu.memory_space<vmem>>, %arg16: memref<64x3xf32, #tpu.memory_space<vmem>>, %arg17: memref<64x32xf32, #tpu.memory_space<vmem>>, %arg18: memref<64x128xf32, #tpu.memory_space<vmem>>) attributes {dimension_semantics = [#tpu.dimension_semantics<arbitrary>], iteration_bounds = array<i64: 1>, scalar_prefetch = 0 : i64, scratch_operands = 2 : i64, tpu.core_type = #tpu.core_type<tc>, window_params = [{pipeline_mode = #tpu.pipeline_mode<synchronous>, transform_indices = @transform_0, window_bounds = array<i64: 64, 4>}, {pipeline_mode = #tpu.pipeline_mode<synchronous>, transform_indices = @transform_1, window_bounds = array<i64: 8, 5>}, {pipeline_mode = #tpu.pipeline_mode<synchronous>, transform_indices = @transform_2, window_bounds = array<i64: 5, 32>}, {pipeline_mode = #tpu.pipeline_mode<synchronous>, transform_indices = @transform_3, window_bounds = array<i64: 1, 32>}, {pipeline_mode = #tpu.pipeline_mode<synchronous>, transform_indices = @transform_4, window_bounds = array<i64: 32, 64>}, {pipeline_mode = #tpu.pipeline_mode<synchronous>, transform_indices = @transform_5, window_bounds = array<i64: 1, 64>}, {pipeline_mode = #tpu.pipeline_mode<synchronous>, transform_indices = @transform_6, window_bounds = array<i64: 64, 128>}, {pipeline_mode = #tpu.pipeline_mode<synchronous>, transform_indices = @transform_7, window_bounds = array<i64: 1, 128>}, {pipeline_mode = #tpu.pipeline_mode<synchronous>, transform_indices = @transform_8, window_bounds = array<i64: 4, 32>}, {pipeline_mode = #tpu.pipeline_mode<synchronous>, transform_indices = @transform_9, window_bounds = array<i64: 1, 32>}, {pipeline_mode = #tpu.pipeline_mode<synchronous>, transform_indices = @transform_10, window_bounds = array<i64: 2, 32, 128>}, {pipeline_mode = #tpu.pipeline_mode<synchronous>, transform_indices = @transform_11, window_bounds = array<i64: 2, 32, 128>}, {pipeline_mode = #tpu.pipeline_mode<synchronous>, transform_indices = @transform_12, window_bounds = array<i64: 2, 1, 128>}, {pipeline_mode = #tpu.pipeline_mode<synchronous>, transform_indices = @transform_13, window_bounds = array<i64: 32, 3>}, {pipeline_mode = #tpu.pipeline_mode<synchronous>, transform_indices = @transform_14, window_bounds = array<i64: 1, 3>}, {pipeline_mode = #tpu.pipeline_mode<synchronous>, transform_indices = @transform_15, window_bounds = array<i64: 64, 3>}]} {
    %c0 = arith.constant 0 : index
    %c0_0 = arith.constant 0 : index
    %0 = vector.load %arg2[%c0, %c0_0] : memref<8x5xf32, #tpu.memory_space<vmem>>, vector<8x5xf32>
    %c0_1 = arith.constant 0 : index
    %c0_2 = arith.constant 0 : index
    %1 = vector.load %arg3[%c0_1, %c0_2] : memref<5x32xf32, #tpu.memory_space<vmem>>, vector<5x32xf32>
    %cst = arith.constant dense<0.000000e+00> : vector<8x32xf32>
    %2 = tpu.matmul %0, %1, %cst {dimension_numbers = #tpu.dot_dimension_numbers<[1], [0], [0], [1], [0, 0, 1, 1], [], []>} : vector<8x5xf32>, vector<5x32xf32>, vector<8x32xf32> -> vector<8x32xf32>
    %c0_3 = arith.constant 0 : index
    %c0_4 = arith.constant 0 : index
    %3 = vector.load %arg4[%c0_3, %c0_4] : memref<1x32xf32, #tpu.memory_space<vmem>>, vector<1x32xf32>
    %4 = vector.broadcast %3 : vector<1x32xf32> to vector<8x32xf32>
    %5 = arith.addf %2, %4 : vector<8x32xf32>
    %cst_5 = arith.constant 0.000000e+00 : f32
    %6 = vector.broadcast %cst_5 : f32 to vector<8x32xf32>
    %7 = arith.maximumf %5, %6 : vector<8x32xf32>
    %c0_6 = arith.constant 0 : index
    %c0_7 = arith.constant 0 : index
    %8 = vector.load %arg5[%c0_6, %c0_7] : memref<32x64xf32, #tpu.memory_space<vmem>>, vector<32x64xf32>
    %cst_8 = arith.constant dense<0.000000e+00> : vector<8x64xf32>
    %9 = tpu.matmul %7, %8, %cst_8 {dimension_numbers = #tpu.dot_dimension_numbers<[1], [0], [0], [1], [0, 0, 1, 1], [], []>} : vector<8x32xf32>, vector<32x64xf32>, vector<8x64xf32> -> vector<8x64xf32>
    %c0_9 = arith.constant 0 : index
    %c0_10 = arith.constant 0 : index
    %10 = vector.load %arg6[%c0_9, %c0_10] : memref<1x64xf32, #tpu.memory_space<vmem>>, vector<1x64xf32>
    %11 = vector.broadcast %10 : vector<1x64xf32> to vector<8x64xf32>
    %12 = arith.addf %9, %11 : vector<8x64xf32>
    %cst_11 = arith.constant 0.000000e+00 : f32
    %13 = vector.broadcast %cst_11 : f32 to vector<8x64xf32>
    %14 = arith.maximumf %12, %13 : vector<8x64xf32>
    %c0_12 = arith.constant 0 : index
    %c0_13 = arith.constant 0 : index
    %15 = vector.load %arg7[%c0_12, %c0_13] : memref<64x128xf32, #tpu.memory_space<vmem>>, vector<64x128xf32>
    %cst_14 = arith.constant dense<0.000000e+00> : vector<8x128xf32>
    %16 = tpu.matmul %14, %15, %cst_14 {dimension_numbers = #tpu.dot_dimension_numbers<[1], [0], [0], [1], [0, 0, 1, 1], [], []>} : vector<8x64xf32>, vector<64x128xf32>, vector<8x128xf32> -> vector<8x128xf32>
    %c0_15 = arith.constant 0 : index
    %c0_16 = arith.constant 0 : index
    %17 = vector.load %arg8[%c0_15, %c0_16] : memref<1x128xf32, #tpu.memory_space<vmem>>, vector<1x128xf32>
    %18 = vector.broadcast %17 : vector<1x128xf32> to vector<8x128xf32>
    %19 = arith.addf %16, %18 : vector<8x128xf32>
    %c0_17 = arith.constant 0 : index
    %c0_18 = arith.constant 0 : index
    %20 = vector.load %arg1[%c0_17, %c0_18] : memref<64x4xf32, #tpu.memory_space<vmem>>, vector<64x4xf32>
    %c0_19 = arith.constant 0 : index
    %c0_20 = arith.constant 0 : index
    %21 = vector.load %arg9[%c0_19, %c0_20] : memref<4x32xf32, #tpu.memory_space<vmem>>, vector<4x32xf32>
    %cst_21 = arith.constant dense<0.000000e+00> : vector<64x32xf32>
    %22 = tpu.matmul %20, %21, %cst_21 {dimension_numbers = #tpu.dot_dimension_numbers<[1], [0], [0], [1], [0, 0, 1, 1], [], []>} : vector<64x4xf32>, vector<4x32xf32>, vector<64x32xf32> -> vector<64x32xf32>
    %c0_22 = arith.constant 0 : index
    %c0_23 = arith.constant 0 : index
    %23 = vector.load %arg10[%c0_22, %c0_23] : memref<1x32xf32, #tpu.memory_space<vmem>>, vector<1x32xf32>
    %24 = vector.broadcast %23 : vector<1x32xf32> to vector<64x32xf32>
    %25 = arith.addf %22, %24 : vector<64x32xf32>
    %cst_24 = arith.constant 0.000000e+00 : f32
    %26 = vector.broadcast %cst_24 : f32 to vector<64x32xf32>
    %27 = arith.maximumf %25, %26 : vector<64x32xf32>
    %c0_25 = arith.constant 0 : index
    %c0_26 = arith.constant 0 : index
    %28 = vector.load %arg17[%c0_25, %c0_26] : memref<64x32xf32, #tpu.memory_space<vmem>>, vector<64x32xf32>
    tpu.vector_store %arg17[%c0_25, %c0_26], %27 {strides = array<i32>} : memref<64x32xf32, #tpu.memory_space<vmem>>, vector<64x32xf32>,
    %c0_27 = arith.constant 0 : index
    %c0_28 = arith.constant 0 : index
    %c0_29 = arith.constant 0 : index
    %29 = vector.load %arg12[%c0_27, %c0_28, %c0_29] : memref<2x32x128xf32, #tpu.memory_space<vmem>>, vector<1x32x128xf32>
    %30 = vector.shape_cast %29 : vector<1x32x128xf32> to vector<32x128xf32>
    %c0_30 = arith.constant 0 : index
    %c0_31 = arith.constant 0 : index
    %31 = vector.load %arg17[%c0_30, %c0_31] : memref<64x32xf32, #tpu.memory_space<vmem>>, vector<64x32xf32>
    %c0_32 = arith.constant 0 : index
    %c0_33 = arith.constant 0 : index
    %c0_34 = arith.constant 0 : index
    %32 = vector.load %arg11[%c0_32, %c0_33, %c0_34] : memref<2x32x128xf32, #tpu.memory_space<vmem>>, vector<1x32x128xf32>
    %33 = vector.shape_cast %32 : vector<1x32x128xf32> to vector<32x128xf32>
    %cst_35 = arith.constant dense<0.000000e+00> : vector<64x128xf32>
    %34 = tpu.matmul %31, %33, %cst_35 {dimension_numbers = #tpu.dot_dimension_numbers<[1], [0], [0], [1], [0, 0, 1, 1], [], []>} : vector<64x32xf32>, vector<32x128xf32>, vector<64x128xf32> -> vector<64x128xf32>
    %c0_36 = arith.constant 0 : index
    %c0_37 = arith.constant 0 : index
    %c0_38 = arith.constant 0 : index
    %35 = vector.load %arg13[%c0_36, %c0_37, %c0_38] : memref<2x1x128xf32, #tpu.memory_space<vmem>>, vector<1x1x128xf32>
    %36 = vector.shape_cast %35 : vector<1x1x128xf32> to vector<1x128xf32>
    %37 = vector.broadcast %36 : vector<1x128xf32> to vector<64x128xf32>
    %38 = arith.addf %34, %37 : vector<64x128xf32>
    %c0_39 = arith.constant 0 : index
    %c0_40 = arith.constant 0 : index
    %39 = vector.load %arg18[%c0_39, %c0_40] : memref<64x128xf32, #tpu.memory_space<vmem>>, vector<64x128xf32>
    tpu.vector_store %arg18[%c0_39, %c0_40], %38 {strides = array<i32>} : memref<64x128xf32, #tpu.memory_space<vmem>>, vector<64x128xf32>,
    %40 = vector.extract_strided_slice %19 {offsets = [0, 0], sizes = [8, 32], strides = [1, 1]} : vector<8x128xf32> to vector<8x32xf32>
    %41 = vector.extract_strided_slice %19 {offsets = [0, 64], sizes = [8, 32], strides = [1, 1]} : vector<8x128xf32> to vector<8x32xf32>
    %c0_i32 = arith.constant 0 : i32
    %c8_i32 = arith.constant 8 : i32
    %42 = arith.muli %c0_i32, %c8_i32 : i32
    %43 = tpu.assume_multiple %42, 8 : i32
    %44 = arith.index_cast %43 : i32 to index
    %c0_41 = arith.constant 0 : index
    %45 = vector.load %arg18[%44, %c0_41] : memref<64x128xf32, #tpu.memory_space<vmem>>, vector<8x128xf32>
    %cst_42 = arith.constant dense<0.000000e+00> : vector<8x128xf32>
    %46 = tpu.matmul %40, %30, %cst_42 {dimension_numbers = #tpu.dot_dimension_numbers<[1], [0], [0], [1], [0, 0, 1, 1], [], []>} : vector<8x32xf32>, vector<32x128xf32>, vector<8x128xf32> -> vector<8x128xf32>
    %47 = arith.addf %45, %46 : vector<8x128xf32>
    %48 = vector.extract_strided_slice %47 {offsets = [0, 0], sizes = [8, 32], strides = [1, 1]} : vector<8x128xf32> to vector<8x32xf32>
    %49 = arith.negf %48 : vector<8x32xf32>
    %50 = math.exp %49 : vector<8x32xf32>
    %cst_43 = arith.constant 1.000000e+00 : f32
    %51 = vector.broadcast %cst_43 : f32 to vector<8x32xf32>
    %52 = arith.addf %51, %50 : vector<8x32xf32>
    %53 = arith.divf %51, %52 : vector<8x32xf32>
    %54 = vector.extract_strided_slice %47 {offsets = [0, 32], sizes = [8, 32], strides = [1, 1]} : vector<8x128xf32> to vector<8x32xf32>
    %55 = arith.negf %54 : vector<8x32xf32>
    %56 = math.exp %55 : vector<8x32xf32>
    %cst_44 = arith.constant 1.000000e+00 : f32
    %57 = vector.broadcast %cst_44 : f32 to vector<8x32xf32>
    %58 = arith.addf %57, %56 : vector<8x32xf32>
    %59 = arith.divf %57, %58 : vector<8x32xf32>
    %60 = vector.extract_strided_slice %47 {offsets = [0, 64], sizes = [8, 32], strides = [1, 1]} : vector<8x128xf32> to vector<8x32xf32>
    %61 = math.tanh %60 : vector<8x32xf32>
    %62 = vector.extract_strided_slice %47 {offsets = [0, 96], sizes = [8, 32], strides = [1, 1]} : vector<8x128xf32> to vector<8x32xf32>
    %63 = arith.negf %62 : vector<8x32xf32>
    %64 = math.exp %63 : vector<8x32xf32>
    %cst_45 = arith.constant 1.000000e+00 : f32
    %65 = vector.broadcast %cst_45 : f32 to vector<8x32xf32>
    %66 = arith.addf %65, %64 : vector<8x32xf32>
    %67 = arith.divf %65, %66 : vector<8x32xf32>
    %68 = arith.mulf %59, %41 : vector<8x32xf32>
    %69 = arith.mulf %53, %61 : vector<8x32xf32>
    %70 = arith.addf %68, %69 : vector<8x32xf32>
    %71 = math.tanh %70 : vector<8x32xf32>
    %72 = arith.mulf %67, %71 : vector<8x32xf32>
    %73 = arith.index_cast %43 : i32 to index
    %c0_46 = arith.constant 0 : index
    %74 = vector.load %arg17[%73, %c0_46] : memref<64x32xf32, #tpu.memory_space<vmem>>, vector<8x32xf32>
    tpu.vector_store %arg17[%73, %c0_46], %72 {strides = array<i32>} : memref<64x32xf32, #tpu.memory_space<vmem>>, vector<8x32xf32>,
    %c1_i32 = arith.constant 1 : i32
    %c8_i32_47 = arith.constant 8 : i32
    %75 = arith.muli %c1_i32, %c8_i32_47 : i32
    %76 = tpu.assume_multiple %75, 8 : i32
    %77 = arith.index_cast %76 : i32 to index
    %c0_48 = arith.constant 0 : index
    %78 = vector.load %arg18[%77, %c0_48] : memref<64x128xf32, #tpu.memory_space<vmem>>, vector<8x128xf32>
    %cst_49 = arith.constant dense<0.000000e+00> : vector<8x128xf32>
    %79 = tpu.matmul %72, %30, %cst_49 {dimension_numbers = #tpu.dot_dimension_numbers<[1], [0], [0], [1], [0, 0, 1, 1], [], []>} : vector<8x32xf32>, vector<32x128xf32>, vector<8x128xf32> -> vector<8x128xf32>
    %80 = arith.addf %78, %79 : vector<8x128xf32>
    %81 = vector.extract_strided_slice %80 {offsets = [0, 0], sizes = [8, 32], strides = [1, 1]} : vector<8x128xf32> to vector<8x32xf32>
    %82 = arith.negf %81 : vector<8x32xf32>
    %83 = math.exp %82 : vector<8x32xf32>
    %cst_50 = arith.constant 1.000000e+00 : f32
    %84 = vector.broadcast %cst_50 : f32 to vector<8x32xf32>
    %85 = arith.addf %84, %83 : vector<8x32xf32>
    %86 = arith.divf %84, %85 : vector<8x32xf32>
    %87 = vector.extract_strided_slice %80 {offsets = [0, 32], sizes = [8, 32], strides = [1, 1]} : vector<8x128xf32> to vector<8x32xf32>
    %88 = arith.negf %87 : vector<8x32xf32>
    %89 = math.exp %88 : vector<8x32xf32>
    %cst_51 = arith.constant 1.000000e+00 : f32
    %90 = vector.broadcast %cst_51 : f32 to vector<8x32xf32>
    %91 = arith.addf %90, %89 : vector<8x32xf32>
    %92 = arith.divf %90, %91 : vector<8x32xf32>
    %93 = vector.extract_strided_slice %80 {offsets = [0, 64], sizes = [8, 32], strides = [1, 1]} : vector<8x128xf32> to vector<8x32xf32>
    %94 = math.tanh %93 : vector<8x32xf32>
    %95 = vector.extract_strided_slice %80 {offsets = [0, 96], sizes = [8, 32], strides = [1, 1]} : vector<8x128xf32> to vector<8x32xf32>
    %96 = arith.negf %95 : vector<8x32xf32>
    %97 = math.exp %96 : vector<8x32xf32>
    %cst_52 = arith.constant 1.000000e+00 : f32
    %98 = vector.broadcast %cst_52 : f32 to vector<8x32xf32>
    %99 = arith.addf %98, %97 : vector<8x32xf32>
    %100 = arith.divf %98, %99 : vector<8x32xf32>
    %101 = arith.mulf %92, %70 : vector<8x32xf32>
    %102 = arith.mulf %86, %94 : vector<8x32xf32>
    %103 = arith.addf %101, %102 : vector<8x32xf32>
    %104 = math.tanh %103 : vector<8x32xf32>
    %105 = arith.mulf %100, %104 : vector<8x32xf32>
    %106 = arith.index_cast %76 : i32 to index
    %c0_53 = arith.constant 0 : index
    %107 = vector.load %arg17[%106, %c0_53] : memref<64x32xf32, #tpu.memory_space<vmem>>, vector<8x32xf32>
    tpu.vector_store %arg17[%106, %c0_53], %105 {strides = array<i32>} : memref<64x32xf32, #tpu.memory_space<vmem>>, vector<8x32xf32>,
    %c2_i32 = arith.constant 2 : i32
    %c8_i32_54 = arith.constant 8 : i32
    %108 = arith.muli %c2_i32, %c8_i32_54 : i32
    %109 = tpu.assume_multiple %108, 8 : i32
    %110 = arith.index_cast %109 : i32 to index
    %c0_55 = arith.constant 0 : index
    %111 = vector.load %arg18[%110, %c0_55] : memref<64x128xf32, #tpu.memory_space<vmem>>, vector<8x128xf32>
    %cst_56 = arith.constant dense<0.000000e+00> : vector<8x128xf32>
    %112 = tpu.matmul %105, %30, %cst_56 {dimension_numbers = #tpu.dot_dimension_numbers<[1], [0], [0], [1], [0, 0, 1, 1], [], []>} : vector<8x32xf32>, vector<32x128xf32>, vector<8x128xf32> -> vector<8x128xf32>
    %113 = arith.addf %111, %112 : vector<8x128xf32>
    %114 = vector.extract_strided_slice %113 {offsets = [0, 0], sizes = [8, 32], strides = [1, 1]} : vector<8x128xf32> to vector<8x32xf32>
    %115 = arith.negf %114 : vector<8x32xf32>
    %116 = math.exp %115 : vector<8x32xf32>
    %cst_57 = arith.constant 1.000000e+00 : f32
    %117 = vector.broadcast %cst_57 : f32 to vector<8x32xf32>
    %118 = arith.addf %117, %116 : vector<8x32xf32>
    %119 = arith.divf %117, %118 : vector<8x32xf32>
    %120 = vector.extract_strided_slice %113 {offsets = [0, 32], sizes = [8, 32], strides = [1, 1]} : vector<8x128xf32> to vector<8x32xf32>
    %121 = arith.negf %120 : vector<8x32xf32>
    %122 = math.exp %121 : vector<8x32xf32>
    %cst_58 = arith.constant 1.000000e+00 : f32
    %123 = vector.broadcast %cst_58 : f32 to vector<8x32xf32>
    %124 = arith.addf %123, %122 : vector<8x32xf32>
    %125 = arith.divf %123, %124 : vector<8x32xf32>
    %126 = vector.extract_strided_slice %113 {offsets = [0, 64], sizes = [8, 32], strides = [1, 1]} : vector<8x128xf32> to vector<8x32xf32>
    %127 = math.tanh %126 : vector<8x32xf32>
    %128 = vector.extract_strided_slice %113 {offsets = [0, 96], sizes = [8, 32], strides = [1, 1]} : vector<8x128xf32> to vector<8x32xf32>
    %129 = arith.negf %128 : vector<8x32xf32>
    %130 = math.exp %129 : vector<8x32xf32>
    %cst_59 = arith.constant 1.000000e+00 : f32
    %131 = vector.broadcast %cst_59 : f32 to vector<8x32xf32>
    %132 = arith.addf %131, %130 : vector<8x32xf32>
    %133 = arith.divf %131, %132 : vector<8x32xf32>
    %134 = arith.mulf %125, %103 : vector<8x32xf32>
    %135 = arith.mulf %119, %127 : vector<8x32xf32>
    %136 = arith.addf %134, %135 : vector<8x32xf32>
    %137 = math.tanh %136 : vector<8x32xf32>
    %138 = arith.mulf %133, %137 : vector<8x32xf32>
    %139 = arith.index_cast %109 : i32 to index
    %c0_60 = arith.constant 0 : index
    %140 = vector.load %arg17[%139, %c0_60] : memref<64x32xf32, #tpu.memory_space<vmem>>, vector<8x32xf32>
    tpu.vector_store %arg17[%139, %c0_60], %138 {strides = array<i32>} : memref<64x32xf32, #tpu.memory_space<vmem>>, vector<8x32xf32>,
    %c3_i32 = arith.constant 3 : i32
    %c8_i32_61 = arith.constant 8 : i32
    %141 = arith.muli %c3_i32, %c8_i32_61 : i32
    %142 = tpu.assume_multiple %141, 8 : i32
    %143 = arith.index_cast %142 : i32 to index
    %c0_62 = arith.constant 0 : index
    %144 = vector.load %arg18[%143, %c0_62] : memref<64x128xf32, #tpu.memory_space<vmem>>, vector<8x128xf32>
    %cst_63 = arith.constant dense<0.000000e+00> : vector<8x128xf32>
    %145 = tpu.matmul %138, %30, %cst_63 {dimension_numbers = #tpu.dot_dimension_numbers<[1], [0], [0], [1], [0, 0, 1, 1], [], []>} : vector<8x32xf32>, vector<32x128xf32>, vector<8x128xf32> -> vector<8x128xf32>
    %146 = arith.addf %144, %145 : vector<8x128xf32>
    %147 = vector.extract_strided_slice %146 {offsets = [0, 0], sizes = [8, 32], strides = [1, 1]} : vector<8x128xf32> to vector<8x32xf32>
    %148 = arith.negf %147 : vector<8x32xf32>
    %149 = math.exp %148 : vector<8x32xf32>
    %cst_64 = arith.constant 1.000000e+00 : f32
    %150 = vector.broadcast %cst_64 : f32 to vector<8x32xf32>
    %151 = arith.addf %150, %149 : vector<8x32xf32>
    %152 = arith.divf %150, %151 : vector<8x32xf32>
    %153 = vector.extract_strided_slice %146 {offsets = [0, 32], sizes = [8, 32], strides = [1, 1]} : vector<8x128xf32> to vector<8x32xf32>
    %154 = arith.negf %153 : vector<8x32xf32>
    %155 = math.exp %154 : vector<8x32xf32>
    %cst_65 = arith.constant 1.000000e+00 : f32
    %156 = vector.broadcast %cst_65 : f32 to vector<8x32xf32>
    %157 = arith.addf %156, %155 : vector<8x32xf32>
    %158 = arith.divf %156, %157 : vector<8x32xf32>
    %159 = vector.extract_strided_slice %146 {offsets = [0, 64], sizes = [8, 32], strides = [1, 1]} : vector<8x128xf32> to vector<8x32xf32>
    %160 = math.tanh %159 : vector<8x32xf32>
    %161 = vector.extract_strided_slice %146 {offsets = [0, 96], sizes = [8, 32], strides = [1, 1]} : vector<8x128xf32> to vector<8x32xf32>
    %162 = arith.negf %161 : vector<8x32xf32>
    %163 = math.exp %162 : vector<8x32xf32>
    %cst_66 = arith.constant 1.000000e+00 : f32
    %164 = vector.broadcast %cst_66 : f32 to vector<8x32xf32>
    %165 = arith.addf %164, %163 : vector<8x32xf32>
    %166 = arith.divf %164, %165 : vector<8x32xf32>
    %167 = arith.mulf %158, %136 : vector<8x32xf32>
    %168 = arith.mulf %152, %160 : vector<8x32xf32>
    %169 = arith.addf %167, %168 : vector<8x32xf32>
    %170 = math.tanh %169 : vector<8x32xf32>
    %171 = arith.mulf %166, %170 : vector<8x32xf32>
    %172 = arith.index_cast %142 : i32 to index
    %c0_67 = arith.constant 0 : index
    %173 = vector.load %arg17[%172, %c0_67] : memref<64x32xf32, #tpu.memory_space<vmem>>, vector<8x32xf32>
    tpu.vector_store %arg17[%172, %c0_67], %171 {strides = array<i32>} : memref<64x32xf32, #tpu.memory_space<vmem>>, vector<8x32xf32>,
    %c4_i32 = arith.constant 4 : i32
    %c8_i32_68 = arith.constant 8 : i32
    %174 = arith.muli %c4_i32, %c8_i32_68 : i32
    %175 = tpu.assume_multiple %174, 8 : i32
    %176 = arith.index_cast %175 : i32 to index
    %c0_69 = arith.constant 0 : index
    %177 = vector.load %arg18[%176, %c0_69] : memref<64x128xf32, #tpu.memory_space<vmem>>, vector<8x128xf32>
    %cst_70 = arith.constant dense<0.000000e+00> : vector<8x128xf32>
    %178 = tpu.matmul %171, %30, %cst_70 {dimension_numbers = #tpu.dot_dimension_numbers<[1], [0], [0], [1], [0, 0, 1, 1], [], []>} : vector<8x32xf32>, vector<32x128xf32>, vector<8x128xf32> -> vector<8x128xf32>
    %179 = arith.addf %177, %178 : vector<8x128xf32>
    %180 = vector.extract_strided_slice %179 {offsets = [0, 0], sizes = [8, 32], strides = [1, 1]} : vector<8x128xf32> to vector<8x32xf32>
    %181 = arith.negf %180 : vector<8x32xf32>
    %182 = math.exp %181 : vector<8x32xf32>
    %cst_71 = arith.constant 1.000000e+00 : f32
    %183 = vector.broadcast %cst_71 : f32 to vector<8x32xf32>
    %184 = arith.addf %183, %182 : vector<8x32xf32>
    %185 = arith.divf %183, %184 : vector<8x32xf32>
    %186 = vector.extract_strided_slice %179 {offsets = [0, 32], sizes = [8, 32], strides = [1, 1]} : vector<8x128xf32> to vector<8x32xf32>
    %187 = arith.negf %186 : vector<8x32xf32>
    %188 = math.exp %187 : vector<8x32xf32>
    %cst_72 = arith.constant 1.000000e+00 : f32
    %189 = vector.broadcast %cst_72 : f32 to vector<8x32xf32>
    %190 = arith.addf %189, %188 : vector<8x32xf32>
    %191 = arith.divf %189, %190 : vector<8x32xf32>
    %192 = vector.extract_strided_slice %179 {offsets = [0, 64], sizes = [8, 32], strides = [1, 1]} : vector<8x128xf32> to vector<8x32xf32>
    %193 = math.tanh %192 : vector<8x32xf32>
    %194 = vector.extract_strided_slice %179 {offsets = [0, 96], sizes = [8, 32], strides = [1, 1]} : vector<8x128xf32> to vector<8x32xf32>
    %195 = arith.negf %194 : vector<8x32xf32>
    %196 = math.exp %195 : vector<8x32xf32>
    %cst_73 = arith.constant 1.000000e+00 : f32
    %197 = vector.broadcast %cst_73 : f32 to vector<8x32xf32>
    %198 = arith.addf %197, %196 : vector<8x32xf32>
    %199 = arith.divf %197, %198 : vector<8x32xf32>
    %200 = arith.mulf %191, %169 : vector<8x32xf32>
    %201 = arith.mulf %185, %193 : vector<8x32xf32>
    %202 = arith.addf %200, %201 : vector<8x32xf32>
    %203 = math.tanh %202 : vector<8x32xf32>
    %204 = arith.mulf %199, %203 : vector<8x32xf32>
    %205 = arith.index_cast %175 : i32 to index
    %c0_74 = arith.constant 0 : index
    %206 = vector.load %arg17[%205, %c0_74] : memref<64x32xf32, #tpu.memory_space<vmem>>, vector<8x32xf32>
    tpu.vector_store %arg17[%205, %c0_74], %204 {strides = array<i32>} : memref<64x32xf32, #tpu.memory_space<vmem>>, vector<8x32xf32>,
    %c5_i32 = arith.constant 5 : i32
    %c8_i32_75 = arith.constant 8 : i32
    %207 = arith.muli %c5_i32, %c8_i32_75 : i32
    %208 = tpu.assume_multiple %207, 8 : i32
    %209 = arith.index_cast %208 : i32 to index
    %c0_76 = arith.constant 0 : index
    %210 = vector.load %arg18[%209, %c0_76] : memref<64x128xf32, #tpu.memory_space<vmem>>, vector<8x128xf32>
    %cst_77 = arith.constant dense<0.000000e+00> : vector<8x128xf32>
    %211 = tpu.matmul %204, %30, %cst_77 {dimension_numbers = #tpu.dot_dimension_numbers<[1], [0], [0], [1], [0, 0, 1, 1], [], []>} : vector<8x32xf32>, vector<32x128xf32>, vector<8x128xf32> -> vector<8x128xf32>
    %212 = arith.addf %210, %211 : vector<8x128xf32>
    %213 = vector.extract_strided_slice %212 {offsets = [0, 0], sizes = [8, 32], strides = [1, 1]} : vector<8x128xf32> to vector<8x32xf32>
    %214 = arith.negf %213 : vector<8x32xf32>
    %215 = math.exp %214 : vector<8x32xf32>
    %cst_78 = arith.constant 1.000000e+00 : f32
    %216 = vector.broadcast %cst_78 : f32 to vector<8x32xf32>
    %217 = arith.addf %216, %215 : vector<8x32xf32>
    %218 = arith.divf %216, %217 : vector<8x32xf32>
    %219 = vector.extract_strided_slice %212 {offsets = [0, 32], sizes = [8, 32], strides = [1, 1]} : vector<8x128xf32> to vector<8x32xf32>
    %220 = arith.negf %219 : vector<8x32xf32>
    %221 = math.exp %220 : vector<8x32xf32>
    %cst_79 = arith.constant 1.000000e+00 : f32
    %222 = vector.broadcast %cst_79 : f32 to vector<8x32xf32>
    %223 = arith.addf %222, %221 : vector<8x32xf32>
    %224 = arith.divf %222, %223 : vector<8x32xf32>
    %225 = vector.extract_strided_slice %212 {offsets = [0, 64], sizes = [8, 32], strides = [1, 1]} : vector<8x128xf32> to vector<8x32xf32>
    %226 = math.tanh %225 : vector<8x32xf32>
    %227 = vector.extract_strided_slice %212 {offsets = [0, 96], sizes = [8, 32], strides = [1, 1]} : vector<8x128xf32> to vector<8x32xf32>
    %228 = arith.negf %227 : vector<8x32xf32>
    %229 = math.exp %228 : vector<8x32xf32>
    %cst_80 = arith.constant 1.000000e+00 : f32
    %230 = vector.broadcast %cst_80 : f32 to vector<8x32xf32>
    %231 = arith.addf %230, %229 : vector<8x32xf32>
    %232 = arith.divf %230, %231 : vector<8x32xf32>
    %233 = arith.mulf %224, %202 : vector<8x32xf32>
    %234 = arith.mulf %218, %226 : vector<8x32xf32>
    %235 = arith.addf %233, %234 : vector<8x32xf32>
    %236 = math.tanh %235 : vector<8x32xf32>
    %237 = arith.mulf %232, %236 : vector<8x32xf32>
    %238 = arith.index_cast %208 : i32 to index
    %c0_81 = arith.constant 0 : index
    %239 = vector.load %arg17[%238, %c0_81] : memref<64x32xf32, #tpu.memory_space<vmem>>, vector<8x32xf32>
    tpu.vector_store %arg17[%238, %c0_81], %237 {strides = array<i32>} : memref<64x32xf32, #tpu.memory_space<vmem>>, vector<8x32xf32>,
    %c6_i32 = arith.constant 6 : i32
    %c8_i32_82 = arith.constant 8 : i32
    %240 = arith.muli %c6_i32, %c8_i32_82 : i32
    %241 = tpu.assume_multiple %240, 8 : i32
    %242 = arith.index_cast %241 : i32 to index
    %c0_83 = arith.constant 0 : index
    %243 = vector.load %arg18[%242, %c0_83] : memref<64x128xf32, #tpu.memory_space<vmem>>, vector<8x128xf32>
    %cst_84 = arith.constant dense<0.000000e+00> : vector<8x128xf32>
    %244 = tpu.matmul %237, %30, %cst_84 {dimension_numbers = #tpu.dot_dimension_numbers<[1], [0], [0], [1], [0, 0, 1, 1], [], []>} : vector<8x32xf32>, vector<32x128xf32>, vector<8x128xf32> -> vector<8x128xf32>
    %245 = arith.addf %243, %244 : vector<8x128xf32>
    %246 = vector.extract_strided_slice %245 {offsets = [0, 0], sizes = [8, 32], strides = [1, 1]} : vector<8x128xf32> to vector<8x32xf32>
    %247 = arith.negf %246 : vector<8x32xf32>
    %248 = math.exp %247 : vector<8x32xf32>
    %cst_85 = arith.constant 1.000000e+00 : f32
    %249 = vector.broadcast %cst_85 : f32 to vector<8x32xf32>
    %250 = arith.addf %249, %248 : vector<8x32xf32>
    %251 = arith.divf %249, %250 : vector<8x32xf32>
    %252 = vector.extract_strided_slice %245 {offsets = [0, 32], sizes = [8, 32], strides = [1, 1]} : vector<8x128xf32> to vector<8x32xf32>
    %253 = arith.negf %252 : vector<8x32xf32>
    %254 = math.exp %253 : vector<8x32xf32>
    %cst_86 = arith.constant 1.000000e+00 : f32
    %255 = vector.broadcast %cst_86 : f32 to vector<8x32xf32>
    %256 = arith.addf %255, %254 : vector<8x32xf32>
    %257 = arith.divf %255, %256 : vector<8x32xf32>
    %258 = vector.extract_strided_slice %245 {offsets = [0, 64], sizes = [8, 32], strides = [1, 1]} : vector<8x128xf32> to vector<8x32xf32>
    %259 = math.tanh %258 : vector<8x32xf32>
    %260 = vector.extract_strided_slice %245 {offsets = [0, 96], sizes = [8, 32], strides = [1, 1]} : vector<8x128xf32> to vector<8x32xf32>
    %261 = arith.negf %260 : vector<8x32xf32>
    %262 = math.exp %261 : vector<8x32xf32>
    %cst_87 = arith.constant 1.000000e+00 : f32
    %263 = vector.broadcast %cst_87 : f32 to vector<8x32xf32>
    %264 = arith.addf %263, %262 : vector<8x32xf32>
    %265 = arith.divf %263, %264 : vector<8x32xf32>
    %266 = arith.mulf %257, %235 : vector<8x32xf32>
    %267 = arith.mulf %251, %259 : vector<8x32xf32>
    %268 = arith.addf %266, %267 : vector<8x32xf32>
    %269 = math.tanh %268 : vector<8x32xf32>
    %270 = arith.mulf %265, %269 : vector<8x32xf32>
    %271 = arith.index_cast %241 : i32 to index
    %c0_88 = arith.constant 0 : index
    %272 = vector.load %arg17[%271, %c0_88] : memref<64x32xf32, #tpu.memory_space<vmem>>, vector<8x32xf32>
    tpu.vector_store %arg17[%271, %c0_88], %270 {strides = array<i32>} : memref<64x32xf32, #tpu.memory_space<vmem>>, vector<8x32xf32>,
    %c7_i32 = arith.constant 7 : i32
    %c8_i32_89 = arith.constant 8 : i32
    %273 = arith.muli %c7_i32, %c8_i32_89 : i32
    %274 = tpu.assume_multiple %273, 8 : i32
    %275 = arith.index_cast %274 : i32 to index
    %c0_90 = arith.constant 0 : index
    %276 = vector.load %arg18[%275, %c0_90] : memref<64x128xf32, #tpu.memory_space<vmem>>, vector<8x128xf32>
    %cst_91 = arith.constant dense<0.000000e+00> : vector<8x128xf32>
    %277 = tpu.matmul %270, %30, %cst_91 {dimension_numbers = #tpu.dot_dimension_numbers<[1], [0], [0], [1], [0, 0, 1, 1], [], []>} : vector<8x32xf32>, vector<32x128xf32>, vector<8x128xf32> -> vector<8x128xf32>
    %278 = arith.addf %276, %277 : vector<8x128xf32>
    %279 = vector.extract_strided_slice %278 {offsets = [0, 0], sizes = [8, 32], strides = [1, 1]} : vector<8x128xf32> to vector<8x32xf32>
    %280 = arith.negf %279 : vector<8x32xf32>
    %281 = math.exp %280 : vector<8x32xf32>
    %cst_92 = arith.constant 1.000000e+00 : f32
    %282 = vector.broadcast %cst_92 : f32 to vector<8x32xf32>
    %283 = arith.addf %282, %281 : vector<8x32xf32>
    %284 = arith.divf %282, %283 : vector<8x32xf32>
    %285 = vector.extract_strided_slice %278 {offsets = [0, 32], sizes = [8, 32], strides = [1, 1]} : vector<8x128xf32> to vector<8x32xf32>
    %286 = arith.negf %285 : vector<8x32xf32>
    %287 = math.exp %286 : vector<8x32xf32>
    %cst_93 = arith.constant 1.000000e+00 : f32
    %288 = vector.broadcast %cst_93 : f32 to vector<8x32xf32>
    %289 = arith.addf %288, %287 : vector<8x32xf32>
    %290 = arith.divf %288, %289 : vector<8x32xf32>
    %291 = vector.extract_strided_slice %278 {offsets = [0, 64], sizes = [8, 32], strides = [1, 1]} : vector<8x128xf32> to vector<8x32xf32>
    %292 = math.tanh %291 : vector<8x32xf32>
    %293 = vector.extract_strided_slice %278 {offsets = [0, 96], sizes = [8, 32], strides = [1, 1]} : vector<8x128xf32> to vector<8x32xf32>
    %294 = arith.negf %293 : vector<8x32xf32>
    %295 = math.exp %294 : vector<8x32xf32>
    %cst_94 = arith.constant 1.000000e+00 : f32
    %296 = vector.broadcast %cst_94 : f32 to vector<8x32xf32>
    %297 = arith.addf %296, %295 : vector<8x32xf32>
    %298 = arith.divf %296, %297 : vector<8x32xf32>
    %299 = arith.mulf %290, %268 : vector<8x32xf32>
    %300 = arith.mulf %284, %292 : vector<8x32xf32>
    %301 = arith.addf %299, %300 : vector<8x32xf32>
    %302 = math.tanh %301 : vector<8x32xf32>
    %303 = arith.mulf %298, %302 : vector<8x32xf32>
    %304 = arith.index_cast %274 : i32 to index
    %c0_95 = arith.constant 0 : index
    %305 = vector.load %arg17[%304, %c0_95] : memref<64x32xf32, #tpu.memory_space<vmem>>, vector<8x32xf32>
    tpu.vector_store %arg17[%304, %c0_95], %303 {strides = array<i32>} : memref<64x32xf32, #tpu.memory_space<vmem>>, vector<8x32xf32>,
    %c8_i32_96 = arith.constant 8 : i32
    %c1 = arith.constant 1 : index
    %c0_97 = arith.constant 0 : index
    %c0_98 = arith.constant 0 : index
    %306 = vector.load %arg12[%c1, %c0_97, %c0_98] : memref<2x32x128xf32, #tpu.memory_space<vmem>>, vector<1x32x128xf32>
    %307 = vector.shape_cast %306 : vector<1x32x128xf32> to vector<32x128xf32>
    %c0_99 = arith.constant 0 : index
    %c0_100 = arith.constant 0 : index
    %308 = vector.load %arg17[%c0_99, %c0_100] : memref<64x32xf32, #tpu.memory_space<vmem>>, vector<64x32xf32>
    %c1_101 = arith.constant 1 : index
    %c0_102 = arith.constant 0 : index
    %c0_103 = arith.constant 0 : index
    %309 = vector.load %arg11[%c1_101, %c0_102, %c0_103] : memref<2x32x128xf32, #tpu.memory_space<vmem>>, vector<1x32x128xf32>
    %310 = vector.shape_cast %309 : vector<1x32x128xf32> to vector<32x128xf32>
    %cst_104 = arith.constant dense<0.000000e+00> : vector<64x128xf32>
    %311 = tpu.matmul %308, %310, %cst_104 {dimension_numbers = #tpu.dot_dimension_numbers<[1], [0], [0], [1], [0, 0, 1, 1], [], []>} : vector<64x32xf32>, vector<32x128xf32>, vector<64x128xf32> -> vector<64x128xf32>
    %c1_105 = arith.constant 1 : index
    %c0_106 = arith.constant 0 : index
    %c0_107 = arith.constant 0 : index
    %312 = vector.load %arg13[%c1_105, %c0_106, %c0_107] : memref<2x1x128xf32, #tpu.memory_space<vmem>>, vector<1x1x128xf32>
    %313 = vector.shape_cast %312 : vector<1x1x128xf32> to vector<1x128xf32>
    %314 = vector.broadcast %313 : vector<1x128xf32> to vector<64x128xf32>
    %315 = arith.addf %311, %314 : vector<64x128xf32>
    %c0_108 = arith.constant 0 : index
    %c0_109 = arith.constant 0 : index
    %316 = vector.load %arg18[%c0_108, %c0_109] : memref<64x128xf32, #tpu.memory_space<vmem>>, vector<64x128xf32>
    tpu.vector_store %arg18[%c0_108, %c0_109], %315 {strides = array<i32>} : memref<64x128xf32, #tpu.memory_space<vmem>>, vector<64x128xf32>,
    %317 = vector.extract_strided_slice %19 {offsets = [0, 32], sizes = [8, 32], strides = [1, 1]} : vector<8x128xf32> to vector<8x32xf32>
    %318 = vector.extract_strided_slice %19 {offsets = [0, 96], sizes = [8, 32], strides = [1, 1]} : vector<8x128xf32> to vector<8x32xf32>
    %c0_i32_110 = arith.constant 0 : i32
    %c8_i32_111 = arith.constant 8 : i32
    %319 = arith.muli %c0_i32_110, %c8_i32_111 : i32
    %320 = tpu.assume_multiple %319, 8 : i32
    %321 = arith.index_cast %320 : i32 to index
    %c0_112 = arith.constant 0 : index
    %322 = vector.load %arg18[%321, %c0_112] : memref<64x128xf32, #tpu.memory_space<vmem>>, vector<8x128xf32>
    %cst_113 = arith.constant dense<0.000000e+00> : vector<8x128xf32>
    %323 = tpu.matmul %317, %307, %cst_113 {dimension_numbers = #tpu.dot_dimension_numbers<[1], [0], [0], [1], [0, 0, 1, 1], [], []>} : vector<8x32xf32>, vector<32x128xf32>, vector<8x128xf32> -> vector<8x128xf32>
    %324 = arith.addf %322, %323 : vector<8x128xf32>
    %325 = vector.extract_strided_slice %324 {offsets = [0, 0], sizes = [8, 32], strides = [1, 1]} : vector<8x128xf32> to vector<8x32xf32>
    %326 = arith.negf %325 : vector<8x32xf32>
    %327 = math.exp %326 : vector<8x32xf32>
    %cst_114 = arith.constant 1.000000e+00 : f32
    %328 = vector.broadcast %cst_114 : f32 to vector<8x32xf32>
    %329 = arith.addf %328, %327 : vector<8x32xf32>
    %330 = arith.divf %328, %329 : vector<8x32xf32>
    %331 = vector.extract_strided_slice %324 {offsets = [0, 32], sizes = [8, 32], strides = [1, 1]} : vector<8x128xf32> to vector<8x32xf32>
    %332 = arith.negf %331 : vector<8x32xf32>
    %333 = math.exp %332 : vector<8x32xf32>
    %cst_115 = arith.constant 1.000000e+00 : f32
    %334 = vector.broadcast %cst_115 : f32 to vector<8x32xf32>
    %335 = arith.addf %334, %333 : vector<8x32xf32>
    %336 = arith.divf %334, %335 : vector<8x32xf32>
    %337 = vector.extract_strided_slice %324 {offsets = [0, 64], sizes = [8, 32], strides = [1, 1]} : vector<8x128xf32> to vector<8x32xf32>
    %338 = math.tanh %337 : vector<8x32xf32>
    %339 = vector.extract_strided_slice %324 {offsets = [0, 96], sizes = [8, 32], strides = [1, 1]} : vector<8x128xf32> to vector<8x32xf32>
    %340 = arith.negf %339 : vector<8x32xf32>
    %341 = math.exp %340 : vector<8x32xf32>
    %cst_116 = arith.constant 1.000000e+00 : f32
    %342 = vector.broadcast %cst_116 : f32 to vector<8x32xf32>
    %343 = arith.addf %342, %341 : vector<8x32xf32>
    %344 = arith.divf %342, %343 : vector<8x32xf32>
    %345 = arith.mulf %336, %318 : vector<8x32xf32>
    %346 = arith.mulf %330, %338 : vector<8x32xf32>
    %347 = arith.addf %345, %346 : vector<8x32xf32>
    %348 = math.tanh %347 : vector<8x32xf32>
    %349 = arith.mulf %344, %348 : vector<8x32xf32>
    %350 = arith.index_cast %320 : i32 to index
    %c0_117 = arith.constant 0 : index
    %351 = vector.load %arg17[%350, %c0_117] : memref<64x32xf32, #tpu.memory_space<vmem>>, vector<8x32xf32>
    tpu.vector_store %arg17[%350, %c0_117], %349 {strides = array<i32>} : memref<64x32xf32, #tpu.memory_space<vmem>>, vector<8x32xf32>,
    %c1_i32_118 = arith.constant 1 : i32
    %c8_i32_119 = arith.constant 8 : i32
    %352 = arith.muli %c1_i32_118, %c8_i32_119 : i32
    %353 = tpu.assume_multiple %352, 8 : i32
    %354 = arith.index_cast %353 : i32 to index
    %c0_120 = arith.constant 0 : index
    %355 = vector.load %arg18[%354, %c0_120] : memref<64x128xf32, #tpu.memory_space<vmem>>, vector<8x128xf32>
    %cst_121 = arith.constant dense<0.000000e+00> : vector<8x128xf32>
    %356 = tpu.matmul %349, %307, %cst_121 {dimension_numbers = #tpu.dot_dimension_numbers<[1], [0], [0], [1], [0, 0, 1, 1], [], []>} : vector<8x32xf32>, vector<32x128xf32>, vector<8x128xf32> -> vector<8x128xf32>
    %357 = arith.addf %355, %356 : vector<8x128xf32>
    %358 = vector.extract_strided_slice %357 {offsets = [0, 0], sizes = [8, 32], strides = [1, 1]} : vector<8x128xf32> to vector<8x32xf32>
    %359 = arith.negf %358 : vector<8x32xf32>
    %360 = math.exp %359 : vector<8x32xf32>
    %cst_122 = arith.constant 1.000000e+00 : f32
    %361 = vector.broadcast %cst_122 : f32 to vector<8x32xf32>
    %362 = arith.addf %361, %360 : vector<8x32xf32>
    %363 = arith.divf %361, %362 : vector<8x32xf32>
    %364 = vector.extract_strided_slice %357 {offsets = [0, 32], sizes = [8, 32], strides = [1, 1]} : vector<8x128xf32> to vector<8x32xf32>
    %365 = arith.negf %364 : vector<8x32xf32>
    %366 = math.exp %365 : vector<8x32xf32>
    %cst_123 = arith.constant 1.000000e+00 : f32
    %367 = vector.broadcast %cst_123 : f32 to vector<8x32xf32>
    %368 = arith.addf %367, %366 : vector<8x32xf32>
    %369 = arith.divf %367, %368 : vector<8x32xf32>
    %370 = vector.extract_strided_slice %357 {offsets = [0, 64], sizes = [8, 32], strides = [1, 1]} : vector<8x128xf32> to vector<8x32xf32>
    %371 = math.tanh %370 : vector<8x32xf32>
    %372 = vector.extract_strided_slice %357 {offsets = [0, 96], sizes = [8, 32], strides = [1, 1]} : vector<8x128xf32> to vector<8x32xf32>
    %373 = arith.negf %372 : vector<8x32xf32>
    %374 = math.exp %373 : vector<8x32xf32>
    %cst_124 = arith.constant 1.000000e+00 : f32
    %375 = vector.broadcast %cst_124 : f32 to vector<8x32xf32>
    %376 = arith.addf %375, %374 : vector<8x32xf32>
    %377 = arith.divf %375, %376 : vector<8x32xf32>
    %378 = arith.mulf %369, %347 : vector<8x32xf32>
    %379 = arith.mulf %363, %371 : vector<8x32xf32>
    %380 = arith.addf %378, %379 : vector<8x32xf32>
    %381 = math.tanh %380 : vector<8x32xf32>
    %382 = arith.mulf %377, %381 : vector<8x32xf32>
    %383 = arith.index_cast %353 : i32 to index
    %c0_125 = arith.constant 0 : index
    %384 = vector.load %arg17[%383, %c0_125] : memref<64x32xf32, #tpu.memory_space<vmem>>, vector<8x32xf32>
    tpu.vector_store %arg17[%383, %c0_125], %382 {strides = array<i32>} : memref<64x32xf32, #tpu.memory_space<vmem>>, vector<8x32xf32>,
    %c2_i32_126 = arith.constant 2 : i32
    %c8_i32_127 = arith.constant 8 : i32
    %385 = arith.muli %c2_i32_126, %c8_i32_127 : i32
    %386 = tpu.assume_multiple %385, 8 : i32
    %387 = arith.index_cast %386 : i32 to index
    %c0_128 = arith.constant 0 : index
    %388 = vector.load %arg18[%387, %c0_128] : memref<64x128xf32, #tpu.memory_space<vmem>>, vector<8x128xf32>
    %cst_129 = arith.constant dense<0.000000e+00> : vector<8x128xf32>
    %389 = tpu.matmul %382, %307, %cst_129 {dimension_numbers = #tpu.dot_dimension_numbers<[1], [0], [0], [1], [0, 0, 1, 1], [], []>} : vector<8x32xf32>, vector<32x128xf32>, vector<8x128xf32> -> vector<8x128xf32>
    %390 = arith.addf %388, %389 : vector<8x128xf32>
    %391 = vector.extract_strided_slice %390 {offsets = [0, 0], sizes = [8, 32], strides = [1, 1]} : vector<8x128xf32> to vector<8x32xf32>
    %392 = arith.negf %391 : vector<8x32xf32>
    %393 = math.exp %392 : vector<8x32xf32>
    %cst_130 = arith.constant 1.000000e+00 : f32
    %394 = vector.broadcast %cst_130 : f32 to vector<8x32xf32>
    %395 = arith.addf %394, %393 : vector<8x32xf32>
    %396 = arith.divf %394, %395 : vector<8x32xf32>
    %397 = vector.extract_strided_slice %390 {offsets = [0, 32], sizes = [8, 32], strides = [1, 1]} : vector<8x128xf32> to vector<8x32xf32>
    %398 = arith.negf %397 : vector<8x32xf32>
    %399 = math.exp %398 : vector<8x32xf32>
    %cst_131 = arith.constant 1.000000e+00 : f32
    %400 = vector.broadcast %cst_131 : f32 to vector<8x32xf32>
    %401 = arith.addf %400, %399 : vector<8x32xf32>
    %402 = arith.divf %400, %401 : vector<8x32xf32>
    %403 = vector.extract_strided_slice %390 {offsets = [0, 64], sizes = [8, 32], strides = [1, 1]} : vector<8x128xf32> to vector<8x32xf32>
    %404 = math.tanh %403 : vector<8x32xf32>
    %405 = vector.extract_strided_slice %390 {offsets = [0, 96], sizes = [8, 32], strides = [1, 1]} : vector<8x128xf32> to vector<8x32xf32>
    %406 = arith.negf %405 : vector<8x32xf32>
    %407 = math.exp %406 : vector<8x32xf32>
    %cst_132 = arith.constant 1.000000e+00 : f32
    %408 = vector.broadcast %cst_132 : f32 to vector<8x32xf32>
    %409 = arith.addf %408, %407 : vector<8x32xf32>
    %410 = arith.divf %408, %409 : vector<8x32xf32>
    %411 = arith.mulf %402, %380 : vector<8x32xf32>
    %412 = arith.mulf %396, %404 : vector<8x32xf32>
    %413 = arith.addf %411, %412 : vector<8x32xf32>
    %414 = math.tanh %413 : vector<8x32xf32>
    %415 = arith.mulf %410, %414 : vector<8x32xf32>
    %416 = arith.index_cast %386 : i32 to index
    %c0_133 = arith.constant 0 : index
    %417 = vector.load %arg17[%416, %c0_133] : memref<64x32xf32, #tpu.memory_space<vmem>>, vector<8x32xf32>
    tpu.vector_store %arg17[%416, %c0_133], %415 {strides = array<i32>} : memref<64x32xf32, #tpu.memory_space<vmem>>, vector<8x32xf32>,
    %c3_i32_134 = arith.constant 3 : i32
    %c8_i32_135 = arith.constant 8 : i32
    %418 = arith.muli %c3_i32_134, %c8_i32_135 : i32
    %419 = tpu.assume_multiple %418, 8 : i32
    %420 = arith.index_cast %419 : i32 to index
    %c0_136 = arith.constant 0 : index
    %421 = vector.load %arg18[%420, %c0_136] : memref<64x128xf32, #tpu.memory_space<vmem>>, vector<8x128xf32>
    %cst_137 = arith.constant dense<0.000000e+00> : vector<8x128xf32>
    %422 = tpu.matmul %415, %307, %cst_137 {dimension_numbers = #tpu.dot_dimension_numbers<[1], [0], [0], [1], [0, 0, 1, 1], [], []>} : vector<8x32xf32>, vector<32x128xf32>, vector<8x128xf32> -> vector<8x128xf32>
    %423 = arith.addf %421, %422 : vector<8x128xf32>
    %424 = vector.extract_strided_slice %423 {offsets = [0, 0], sizes = [8, 32], strides = [1, 1]} : vector<8x128xf32> to vector<8x32xf32>
    %425 = arith.negf %424 : vector<8x32xf32>
    %426 = math.exp %425 : vector<8x32xf32>
    %cst_138 = arith.constant 1.000000e+00 : f32
    %427 = vector.broadcast %cst_138 : f32 to vector<8x32xf32>
    %428 = arith.addf %427, %426 : vector<8x32xf32>
    %429 = arith.divf %427, %428 : vector<8x32xf32>
    %430 = vector.extract_strided_slice %423 {offsets = [0, 32], sizes = [8, 32], strides = [1, 1]} : vector<8x128xf32> to vector<8x32xf32>
    %431 = arith.negf %430 : vector<8x32xf32>
    %432 = math.exp %431 : vector<8x32xf32>
    %cst_139 = arith.constant 1.000000e+00 : f32
    %433 = vector.broadcast %cst_139 : f32 to vector<8x32xf32>
    %434 = arith.addf %433, %432 : vector<8x32xf32>
    %435 = arith.divf %433, %434 : vector<8x32xf32>
    %436 = vector.extract_strided_slice %423 {offsets = [0, 64], sizes = [8, 32], strides = [1, 1]} : vector<8x128xf32> to vector<8x32xf32>
    %437 = math.tanh %436 : vector<8x32xf32>
    %438 = vector.extract_strided_slice %423 {offsets = [0, 96], sizes = [8, 32], strides = [1, 1]} : vector<8x128xf32> to vector<8x32xf32>
    %439 = arith.negf %438 : vector<8x32xf32>
    %440 = math.exp %439 : vector<8x32xf32>
    %cst_140 = arith.constant 1.000000e+00 : f32
    %441 = vector.broadcast %cst_140 : f32 to vector<8x32xf32>
    %442 = arith.addf %441, %440 : vector<8x32xf32>
    %443 = arith.divf %441, %442 : vector<8x32xf32>
    %444 = arith.mulf %435, %413 : vector<8x32xf32>
    %445 = arith.mulf %429, %437 : vector<8x32xf32>
    %446 = arith.addf %444, %445 : vector<8x32xf32>
    %447 = math.tanh %446 : vector<8x32xf32>
    %448 = arith.mulf %443, %447 : vector<8x32xf32>
    %449 = arith.index_cast %419 : i32 to index
    %c0_141 = arith.constant 0 : index
    %450 = vector.load %arg17[%449, %c0_141] : memref<64x32xf32, #tpu.memory_space<vmem>>, vector<8x32xf32>
    tpu.vector_store %arg17[%449, %c0_141], %448 {strides = array<i32>} : memref<64x32xf32, #tpu.memory_space<vmem>>, vector<8x32xf32>,
    %c4_i32_142 = arith.constant 4 : i32
    %c8_i32_143 = arith.constant 8 : i32
    %451 = arith.muli %c4_i32_142, %c8_i32_143 : i32
    %452 = tpu.assume_multiple %451, 8 : i32
    %453 = arith.index_cast %452 : i32 to index
    %c0_144 = arith.constant 0 : index
    %454 = vector.load %arg18[%453, %c0_144] : memref<64x128xf32, #tpu.memory_space<vmem>>, vector<8x128xf32>
    %cst_145 = arith.constant dense<0.000000e+00> : vector<8x128xf32>
    %455 = tpu.matmul %448, %307, %cst_145 {dimension_numbers = #tpu.dot_dimension_numbers<[1], [0], [0], [1], [0, 0, 1, 1], [], []>} : vector<8x32xf32>, vector<32x128xf32>, vector<8x128xf32> -> vector<8x128xf32>
    %456 = arith.addf %454, %455 : vector<8x128xf32>
    %457 = vector.extract_strided_slice %456 {offsets = [0, 0], sizes = [8, 32], strides = [1, 1]} : vector<8x128xf32> to vector<8x32xf32>
    %458 = arith.negf %457 : vector<8x32xf32>
    %459 = math.exp %458 : vector<8x32xf32>
    %cst_146 = arith.constant 1.000000e+00 : f32
    %460 = vector.broadcast %cst_146 : f32 to vector<8x32xf32>
    %461 = arith.addf %460, %459 : vector<8x32xf32>
    %462 = arith.divf %460, %461 : vector<8x32xf32>
    %463 = vector.extract_strided_slice %456 {offsets = [0, 32], sizes = [8, 32], strides = [1, 1]} : vector<8x128xf32> to vector<8x32xf32>
    %464 = arith.negf %463 : vector<8x32xf32>
    %465 = math.exp %464 : vector<8x32xf32>
    %cst_147 = arith.constant 1.000000e+00 : f32
    %466 = vector.broadcast %cst_147 : f32 to vector<8x32xf32>
    %467 = arith.addf %466, %465 : vector<8x32xf32>
    %468 = arith.divf %466, %467 : vector<8x32xf32>
    %469 = vector.extract_strided_slice %456 {offsets = [0, 64], sizes = [8, 32], strides = [1, 1]} : vector<8x128xf32> to vector<8x32xf32>
    %470 = math.tanh %469 : vector<8x32xf32>
    %471 = vector.extract_strided_slice %456 {offsets = [0, 96], sizes = [8, 32], strides = [1, 1]} : vector<8x128xf32> to vector<8x32xf32>
    %472 = arith.negf %471 : vector<8x32xf32>
    %473 = math.exp %472 : vector<8x32xf32>
    %cst_148 = arith.constant 1.000000e+00 : f32
    %474 = vector.broadcast %cst_148 : f32 to vector<8x32xf32>
    %475 = arith.addf %474, %473 : vector<8x32xf32>
    %476 = arith.divf %474, %475 : vector<8x32xf32>
    %477 = arith.mulf %468, %446 : vector<8x32xf32>
    %478 = arith.mulf %462, %470 : vector<8x32xf32>
    %479 = arith.addf %477, %478 : vector<8x32xf32>
    %480 = math.tanh %479 : vector<8x32xf32>
    %481 = arith.mulf %476, %480 : vector<8x32xf32>
    %482 = arith.index_cast %452 : i32 to index
    %c0_149 = arith.constant 0 : index
    %483 = vector.load %arg17[%482, %c0_149] : memref<64x32xf32, #tpu.memory_space<vmem>>, vector<8x32xf32>
    tpu.vector_store %arg17[%482, %c0_149], %481 {strides = array<i32>} : memref<64x32xf32, #tpu.memory_space<vmem>>, vector<8x32xf32>,
    %c5_i32_150 = arith.constant 5 : i32
    %c8_i32_151 = arith.constant 8 : i32
    %484 = arith.muli %c5_i32_150, %c8_i32_151 : i32
    %485 = tpu.assume_multiple %484, 8 : i32
    %486 = arith.index_cast %485 : i32 to index
    %c0_152 = arith.constant 0 : index
    %487 = vector.load %arg18[%486, %c0_152] : memref<64x128xf32, #tpu.memory_space<vmem>>, vector<8x128xf32>
    %cst_153 = arith.constant dense<0.000000e+00> : vector<8x128xf32>
    %488 = tpu.matmul %481, %307, %cst_153 {dimension_numbers = #tpu.dot_dimension_numbers<[1], [0], [0], [1], [0, 0, 1, 1], [], []>} : vector<8x32xf32>, vector<32x128xf32>, vector<8x128xf32> -> vector<8x128xf32>
    %489 = arith.addf %487, %488 : vector<8x128xf32>
    %490 = vector.extract_strided_slice %489 {offsets = [0, 0], sizes = [8, 32], strides = [1, 1]} : vector<8x128xf32> to vector<8x32xf32>
    %491 = arith.negf %490 : vector<8x32xf32>
    %492 = math.exp %491 : vector<8x32xf32>
    %cst_154 = arith.constant 1.000000e+00 : f32
    %493 = vector.broadcast %cst_154 : f32 to vector<8x32xf32>
    %494 = arith.addf %493, %492 : vector<8x32xf32>
    %495 = arith.divf %493, %494 : vector<8x32xf32>
    %496 = vector.extract_strided_slice %489 {offsets = [0, 32], sizes = [8, 32], strides = [1, 1]} : vector<8x128xf32> to vector<8x32xf32>
    %497 = arith.negf %496 : vector<8x32xf32>
    %498 = math.exp %497 : vector<8x32xf32>
    %cst_155 = arith.constant 1.000000e+00 : f32
    %499 = vector.broadcast %cst_155 : f32 to vector<8x32xf32>
    %500 = arith.addf %499, %498 : vector<8x32xf32>
    %501 = arith.divf %499, %500 : vector<8x32xf32>
    %502 = vector.extract_strided_slice %489 {offsets = [0, 64], sizes = [8, 32], strides = [1, 1]} : vector<8x128xf32> to vector<8x32xf32>
    %503 = math.tanh %502 : vector<8x32xf32>
    %504 = vector.extract_strided_slice %489 {offsets = [0, 96], sizes = [8, 32], strides = [1, 1]} : vector<8x128xf32> to vector<8x32xf32>
    %505 = arith.negf %504 : vector<8x32xf32>
    %506 = math.exp %505 : vector<8x32xf32>
    %cst_156 = arith.constant 1.000000e+00 : f32
    %507 = vector.broadcast %cst_156 : f32 to vector<8x32xf32>
    %508 = arith.addf %507, %506 : vector<8x32xf32>
    %509 = arith.divf %507, %508 : vector<8x32xf32>
    %510 = arith.mulf %501, %479 : vector<8x32xf32>
    %511 = arith.mulf %495, %503 : vector<8x32xf32>
    %512 = arith.addf %510, %511 : vector<8x32xf32>
    %513 = math.tanh %512 : vector<8x32xf32>
    %514 = arith.mulf %509, %513 : vector<8x32xf32>
    %515 = arith.index_cast %485 : i32 to index
    %c0_157 = arith.constant 0 : index
    %516 = vector.load %arg17[%515, %c0_157] : memref<64x32xf32, #tpu.memory_space<vmem>>, vector<8x32xf32>
    tpu.vector_store %arg17[%515, %c0_157], %514 {strides = array<i32>} : memref<64x32xf32, #tpu.memory_space<vmem>>, vector<8x32xf32>,
    %c6_i32_158 = arith.constant 6 : i32
    %c8_i32_159 = arith.constant 8 : i32
    %517 = arith.muli %c6_i32_158, %c8_i32_159 : i32
    %518 = tpu.assume_multiple %517, 8 : i32
    %519 = arith.index_cast %518 : i32 to index
    %c0_160 = arith.constant 0 : index
    %520 = vector.load %arg18[%519, %c0_160] : memref<64x128xf32, #tpu.memory_space<vmem>>, vector<8x128xf32>
    %cst_161 = arith.constant dense<0.000000e+00> : vector<8x128xf32>
    %521 = tpu.matmul %514, %307, %cst_161 {dimension_numbers = #tpu.dot_dimension_numbers<[1], [0], [0], [1], [0, 0, 1, 1], [], []>} : vector<8x32xf32>, vector<32x128xf32>, vector<8x128xf32> -> vector<8x128xf32>
    %522 = arith.addf %520, %521 : vector<8x128xf32>
    %523 = vector.extract_strided_slice %522 {offsets = [0, 0], sizes = [8, 32], strides = [1, 1]} : vector<8x128xf32> to vector<8x32xf32>
    %524 = arith.negf %523 : vector<8x32xf32>
    %525 = math.exp %524 : vector<8x32xf32>
    %cst_162 = arith.constant 1.000000e+00 : f32
    %526 = vector.broadcast %cst_162 : f32 to vector<8x32xf32>
    %527 = arith.addf %526, %525 : vector<8x32xf32>
    %528 = arith.divf %526, %527 : vector<8x32xf32>
    %529 = vector.extract_strided_slice %522 {offsets = [0, 32], sizes = [8, 32], strides = [1, 1]} : vector<8x128xf32> to vector<8x32xf32>
    %530 = arith.negf %529 : vector<8x32xf32>
    %531 = math.exp %530 : vector<8x32xf32>
    %cst_163 = arith.constant 1.000000e+00 : f32
    %532 = vector.broadcast %cst_163 : f32 to vector<8x32xf32>
    %533 = arith.addf %532, %531 : vector<8x32xf32>
    %534 = arith.divf %532, %533 : vector<8x32xf32>
    %535 = vector.extract_strided_slice %522 {offsets = [0, 64], sizes = [8, 32], strides = [1, 1]} : vector<8x128xf32> to vector<8x32xf32>
    %536 = math.tanh %535 : vector<8x32xf32>
    %537 = vector.extract_strided_slice %522 {offsets = [0, 96], sizes = [8, 32], strides = [1, 1]} : vector<8x128xf32> to vector<8x32xf32>
    %538 = arith.negf %537 : vector<8x32xf32>
    %539 = math.exp %538 : vector<8x32xf32>
    %cst_164 = arith.constant 1.000000e+00 : f32
    %540 = vector.broadcast %cst_164 : f32 to vector<8x32xf32>
    %541 = arith.addf %540, %539 : vector<8x32xf32>
    %542 = arith.divf %540, %541 : vector<8x32xf32>
    %543 = arith.mulf %534, %512 : vector<8x32xf32>
    %544 = arith.mulf %528, %536 : vector<8x32xf32>
    %545 = arith.addf %543, %544 : vector<8x32xf32>
    %546 = math.tanh %545 : vector<8x32xf32>
    %547 = arith.mulf %542, %546 : vector<8x32xf32>
    %548 = arith.index_cast %518 : i32 to index
    %c0_165 = arith.constant 0 : index
    %549 = vector.load %arg17[%548, %c0_165] : memref<64x32xf32, #tpu.memory_space<vmem>>, vector<8x32xf32>
    tpu.vector_store %arg17[%548, %c0_165], %547 {strides = array<i32>} : memref<64x32xf32, #tpu.memory_space<vmem>>, vector<8x32xf32>,
    %c7_i32_166 = arith.constant 7 : i32
    %c8_i32_167 = arith.constant 8 : i32
    %550 = arith.muli %c7_i32_166, %c8_i32_167 : i32
    %551 = tpu.assume_multiple %550, 8 : i32
    %552 = arith.index_cast %551 : i32 to index
    %c0_168 = arith.constant 0 : index
    %553 = vector.load %arg18[%552, %c0_168] : memref<64x128xf32, #tpu.memory_space<vmem>>, vector<8x128xf32>
    %cst_169 = arith.constant dense<0.000000e+00> : vector<8x128xf32>
    %554 = tpu.matmul %547, %307, %cst_169 {dimension_numbers = #tpu.dot_dimension_numbers<[1], [0], [0], [1], [0, 0, 1, 1], [], []>} : vector<8x32xf32>, vector<32x128xf32>, vector<8x128xf32> -> vector<8x128xf32>
    %555 = arith.addf %553, %554 : vector<8x128xf32>
    %556 = vector.extract_strided_slice %555 {offsets = [0, 0], sizes = [8, 32], strides = [1, 1]} : vector<8x128xf32> to vector<8x32xf32>
    %557 = arith.negf %556 : vector<8x32xf32>
    %558 = math.exp %557 : vector<8x32xf32>
    %cst_170 = arith.constant 1.000000e+00 : f32
    %559 = vector.broadcast %cst_170 : f32 to vector<8x32xf32>
    %560 = arith.addf %559, %558 : vector<8x32xf32>
    %561 = arith.divf %559, %560 : vector<8x32xf32>
    %562 = vector.extract_strided_slice %555 {offsets = [0, 32], sizes = [8, 32], strides = [1, 1]} : vector<8x128xf32> to vector<8x32xf32>
    %563 = arith.negf %562 : vector<8x32xf32>
    %564 = math.exp %563 : vector<8x32xf32>
    %cst_171 = arith.constant 1.000000e+00 : f32
    %565 = vector.broadcast %cst_171 : f32 to vector<8x32xf32>
    %566 = arith.addf %565, %564 : vector<8x32xf32>
    %567 = arith.divf %565, %566 : vector<8x32xf32>
    %568 = vector.extract_strided_slice %555 {offsets = [0, 64], sizes = [8, 32], strides = [1, 1]} : vector<8x128xf32> to vector<8x32xf32>
    %569 = math.tanh %568 : vector<8x32xf32>
    %570 = vector.extract_strided_slice %555 {offsets = [0, 96], sizes = [8, 32], strides = [1, 1]} : vector<8x128xf32> to vector<8x32xf32>
    %571 = arith.negf %570 : vector<8x32xf32>
    %572 = math.exp %571 : vector<8x32xf32>
    %cst_172 = arith.constant 1.000000e+00 : f32
    %573 = vector.broadcast %cst_172 : f32 to vector<8x32xf32>
    %574 = arith.addf %573, %572 : vector<8x32xf32>
    %575 = arith.divf %573, %574 : vector<8x32xf32>
    %576 = arith.mulf %567, %545 : vector<8x32xf32>
    %577 = arith.mulf %561, %569 : vector<8x32xf32>
    %578 = arith.addf %576, %577 : vector<8x32xf32>
    %579 = math.tanh %578 : vector<8x32xf32>
    %580 = arith.mulf %575, %579 : vector<8x32xf32>
    %581 = arith.index_cast %551 : i32 to index
    %c0_173 = arith.constant 0 : index
    %582 = vector.load %arg17[%581, %c0_173] : memref<64x32xf32, #tpu.memory_space<vmem>>, vector<8x32xf32>
    tpu.vector_store %arg17[%581, %c0_173], %580 {strides = array<i32>} : memref<64x32xf32, #tpu.memory_space<vmem>>, vector<8x32xf32>,
    %c8_i32_174 = arith.constant 8 : i32
    %c0_175 = arith.constant 0 : index
    %c0_176 = arith.constant 0 : index
    %583 = vector.load %arg17[%c0_175, %c0_176] : memref<64x32xf32, #tpu.memory_space<vmem>>, vector<64x32xf32>
    %c0_177 = arith.constant 0 : index
    %c0_178 = arith.constant 0 : index
    %584 = vector.load %arg14[%c0_177, %c0_178] : memref<32x3xf32, #tpu.memory_space<vmem>>, vector<32x3xf32>
    %cst_179 = arith.constant dense<0.000000e+00> : vector<64x3xf32>
    %585 = tpu.matmul %583, %584, %cst_179 {dimension_numbers = #tpu.dot_dimension_numbers<[1], [0], [0], [1], [0, 0, 1, 1], [], []>} : vector<64x32xf32>, vector<32x3xf32>, vector<64x3xf32> -> vector<64x3xf32>
    %c0_180 = arith.constant 0 : index
    %c0_181 = arith.constant 0 : index
    %586 = vector.load %arg15[%c0_180, %c0_181] : memref<1x3xf32, #tpu.memory_space<vmem>>, vector<1x3xf32>
    %587 = vector.broadcast %586 : vector<1x3xf32> to vector<64x3xf32>
    %588 = arith.addf %585, %587 : vector<64x3xf32>
    %c0_182 = arith.constant 0 : index
    %c0_183 = arith.constant 0 : index
    %589 = vector.load %arg16[%c0_182, %c0_183] : memref<64x3xf32, #tpu.memory_space<vmem>>, vector<64x3xf32>
    tpu.vector_store %arg16[%c0_182, %c0_183], %588 {strides = array<i32>} : memref<64x3xf32, #tpu.memory_space<vmem>>, vector<64x3xf32>,
    return
  }
  func.func @transform_0(%arg0: i32) -> (i32, i32) {
    %c0_i32 = arith.constant 0 : i32
    %c0_i32_0 = arith.constant 0 : i32
    %c0_i32_1 = arith.constant 0 : i32
    return %c0_i32, %c0_i32_0 : i32, i32
  }
  func.func @transform_1(%arg0: i32) -> (i32, i32) {
    %c0_i32 = arith.constant 0 : i32
    %c0_i32_0 = arith.constant 0 : i32
    %c0_i32_1 = arith.constant 0 : i32
    return %c0_i32, %c0_i32_0 : i32, i32
  }
  func.func @transform_2(%arg0: i32) -> (i32, i32) {
    %c0_i32 = arith.constant 0 : i32
    %c0_i32_0 = arith.constant 0 : i32
    %c0_i32_1 = arith.constant 0 : i32
    return %c0_i32, %c0_i32_0 : i32, i32
  }
  func.func @transform_3(%arg0: i32) -> (i32, i32) {
    %c0_i32 = arith.constant 0 : i32
    %c0_i32_0 = arith.constant 0 : i32
    %c0_i32_1 = arith.constant 0 : i32
    return %c0_i32, %c0_i32_0 : i32, i32
  }
  func.func @transform_4(%arg0: i32) -> (i32, i32) {
    %c0_i32 = arith.constant 0 : i32
    %c0_i32_0 = arith.constant 0 : i32
    %c0_i32_1 = arith.constant 0 : i32
    return %c0_i32, %c0_i32_0 : i32, i32
  }
  func.func @transform_5(%arg0: i32) -> (i32, i32) {
    %c0_i32 = arith.constant 0 : i32
    %c0_i32_0 = arith.constant 0 : i32
    %c0_i32_1 = arith.constant 0 : i32
    return %c0_i32, %c0_i32_0 : i32, i32
  }
  func.func @transform_6(%arg0: i32) -> (i32, i32) {
    %c0_i32 = arith.constant 0 : i32
    %c0_i32_0 = arith.constant 0 : i32
    %c0_i32_1 = arith.constant 0 : i32
    return %c0_i32, %c0_i32_0 : i32, i32
  }
  func.func @transform_7(%arg0: i32) -> (i32, i32) {
    %c0_i32 = arith.constant 0 : i32
    %c0_i32_0 = arith.constant 0 : i32
    %c0_i32_1 = arith.constant 0 : i32
    return %c0_i32, %c0_i32_0 : i32, i32
  }
  func.func @transform_8(%arg0: i32) -> (i32, i32) {
    %c0_i32 = arith.constant 0 : i32
    %c0_i32_0 = arith.constant 0 : i32
    %c0_i32_1 = arith.constant 0 : i32
    return %c0_i32, %c0_i32_0 : i32, i32
  }
  func.func @transform_9(%arg0: i32) -> (i32, i32) {
    %c0_i32 = arith.constant 0 : i32
    %c0_i32_0 = arith.constant 0 : i32
    %c0_i32_1 = arith.constant 0 : i32
    return %c0_i32, %c0_i32_0 : i32, i32
  }
  func.func @transform_10(%arg0: i32) -> (i32, i32, i32) {
    %c0_i32 = arith.constant 0 : i32
    %c0_i32_0 = arith.constant 0 : i32
    %c0_i32_1 = arith.constant 0 : i32
    %c0_i32_2 = arith.constant 0 : i32
    return %c0_i32, %c0_i32_0, %c0_i32_1 : i32, i32, i32
  }
  func.func @transform_11(%arg0: i32) -> (i32, i32, i32) {
    %c0_i32 = arith.constant 0 : i32
    %c0_i32_0 = arith.constant 0 : i32
    %c0_i32_1 = arith.constant 0 : i32
    %c0_i32_2 = arith.constant 0 : i32
    return %c0_i32, %c0_i32_0, %c0_i32_1 : i32, i32, i32
  }
  func.func @transform_12(%arg0: i32) -> (i32, i32, i32) {
    %c0_i32 = arith.constant 0 : i32
    %c0_i32_0 = arith.constant 0 : i32
    %c0_i32_1 = arith.constant 0 : i32
    %c0_i32_2 = arith.constant 0 : i32
    return %c0_i32, %c0_i32_0, %c0_i32_1 : i32, i32, i32
  }
  func.func @transform_13(%arg0: i32) -> (i32, i32) {
    %c0_i32 = arith.constant 0 : i32
    %c0_i32_0 = arith.constant 0 : i32
    %c0_i32_1 = arith.constant 0 : i32
    return %c0_i32, %c0_i32_0 : i32, i32
  }
  func.func @transform_14(%arg0: i32) -> (i32, i32) {
    %c0_i32 = arith.constant 0 : i32
    %c0_i32_0 = arith.constant 0 : i32
    %c0_i32_1 = arith.constant 0 : i32
    return %c0_i32, %c0_i32_0 : i32, i32
  }
  func.func @transform_15(%arg0: i32) -> (i32, i32) {
    %c0_i32 = arith.constant 0 : i32
    %c0_i32_0 = arith.constant 0 : i32
    %c0_i32_1 = arith.constant 0 : i32
    return %c0_i32, %c0_i32_0 : i32, i32
  }
}

</mosaic_0001>

<bundles_post_ra>
// kernel: tpu_custom_call.1
= control target key start
LH: loop header
LB: loop body
LE: loop exit
PB: predicated region body
PF: predicated region fallthrough
CT: control target
= control target key end

     0   :  { %20 = vsyncpa [#allocation5], 0  ;;  %s4135_s0 = inlined_call_operand.vmem [shape: f32[64,4], index: 0, kind: input, shape index: {}]   ;;  %s4136_s1 = inlined_call_operand.vmem [shape: f32[8,5], index: 1, kind: input, shape index: {}]   ;;  %s4137_s2 = inlined_call_operand.vmem [shape: f32[5,32], index: 2, kind: input, shape index: {}]   ;;  %s4138_s3 = inlined_call_operand.hbm [shape: f32[1,32], index: 3, kind: input, shape index: {}]   ;;  %s4139_s4 = inlined_call_operand.vmem [shape: f32[32,64], index: 4, kind: input, shape index: {}]   ;;  %s4140_s5 = inlined_call_operand.hbm [shape: f32[1,64], index: 5, kind: input, shape index: {}]   ;;  %s4141_s6 = inlined_call_operand.vmem [shape: f32[64,128], index: 6, kind: input, shape index: {}]   ;;  %s4142_s7 = inlined_call_operand.hbm [shape: f32[1,128], index: 7, kind: input, shape index: {}]   ;;  %s4143_s8 = inlined_call_operand.vmem [shape: f32[4,32], index: 8, kind: input, shape index: {}]   ;;  %s4144_s9 = inlined_call_operand.hbm [shape: f32[1,32], index: 9, kind: input, shape index: {}]   ;;  %s4145_s10 = inlined_call_operand.hbm [shape: f32[2,32,128], index: 10, kind: input, shape index: {}]   ;;  %s4146_s11 = inlined_call_operand.hbm [shape: f32[2,32,128], index: 11, kind: input, shape index: {}]   ;;  %s4147_s12 = inlined_call_operand.vmem [shape: f32[2,1,128], index: 12, kind: input, shape index: {}]   ;;  %s4148_s13 = inlined_call_operand.vmem [shape: f32[32,3], index: 13, kind: input, shape index: {}]   ;;  %s4149_s14 = inlined_call_operand.vmem [shape: f32[1,3], index: 14, kind: input, shape index: {}]   ;;  %s4150_s15 = inlined_call_operand.vmem [shape: f32[64,3], index: 15, kind: output, shape index: {}]  }
   0x1   :  { %21 = vsyncpa [#allocation7], 0 }
   0x2   :  { %22 = vsyncpa [#allocation10], 0 }
   0x3   :  { %23 = vsyncpa [#allocation13], 0  ;;  %s3490_s18 = smov [#allocation6]   ;;  %s3491_s20 = smov [#allocation9]  }
   0x4   :  { %s48_s19 = sshll.u32 %s3490_s18, 4  ;;  %s72_s21 = sshll.u32 %s3491_s20, 4  ;;  %s49_s19 = int_to_ptr.vmem [resolvable:$true] %s48_s19  ;;  %s73_s21 = int_to_ptr.vmem [resolvable:$true] %s72_s21 }
   0x5   :  { %s3370_s22 = scalar_lea.vmem %s49_s19, 16  ;;  %s3374_s23 = scalar_lea.vmem %s49_s19, 32 }
   0x6   :  { %p3371_p0 = scmp.ne.s32.totalorder %s49_s19, %s3370_s22  ;;  %p3375_p1 = scmp.lt.s32.totalorder %s49_s19, %s49_s19 }
   0x7   :  { %p3376_p2 = scmp.lt.s32.totalorder %s3374_s23, %s3370_s22 }
   0x9   :  { %p3377_p3 = por %p3376_p2, %p3375_p1 }
   0xb   :  { %p3378_p4 = pnand %p3377_p3, %p3371_p0 }
   0xd   :  { %3381 = shalt.err (!%p3378_p4)
}
   0xe   :  { %51 = dma.hbm_to_vmem [thread:$0]  %s4140_s5, 16, %s49_s19, [#allocation7]  }
   0xf   :  { %s3390_s26 = scalar_lea.vmem %s73_s21, 16  ;;  %s3394_s27 = scalar_lea.vmem %s73_s21, 32 }
  0x10   :  { %p3391_p5 = scmp.ne.s32.totalorder %s73_s21, %s3390_s26  ;;  %p3395_p6 = scmp.lt.s32.totalorder %s73_s21, %s73_s21 }
  0x11   :  { %p3396_p7 = scmp.lt.s32.totalorder %s3394_s27, %s3390_s26 }
  0x13   :  { %p3397_p8 = por %p3396_p7, %p3395_p6 }
  0x15   :  { %p3398_p9 = pnand %p3397_p8, %p3391_p5 }
  0x17   :  { %3401 = shalt.err (!%p3398_p9)
}
  0x18   :  { %75 = dma.hbm_to_vmem [thread:$0]  %s4144_s9, 16, %s73_s21, [#allocation10]  }
  0x19   :  { %s3492_s30 = smov [#allocation4]   ;;  %s3493_s17 = smov [#allocation8]  }
  0x1a   :  { %s36_s16 = sshll.u32 %s3492_s30, 4  ;;  %s60_s18 = sshll.u32 %s3493_s17, 4  ;;  %s37_s16 = int_to_ptr.vmem [resolvable:$true] %s36_s16  ;;  %s61_s18 = int_to_ptr.vmem [resolvable:$true] %s60_s18 }
  0x1b   :  { %s3410_s20 = scalar_lea.vmem %s37_s16, 16  ;;  %s3414_s5 = scalar_lea.vmem %s37_s16, 32 }
  0x1c   :  { %p3411_p10 = scmp.ne.s32.totalorder %s37_s16, %s3410_s20  ;;  %p3415_p11 = scmp.lt.s32.totalorder %s37_s16, %s37_s16 }
  0x1d   :  { %p3416_p12 = scmp.lt.s32.totalorder %s3414_s5, %s3410_s20 }
  0x1f   :  { %p3417_p13 = por %p3416_p12, %p3415_p11 }
  0x21   :  { %p3418_p0 = pnand %p3417_p13, %p3411_p10 }
  0x23   :  { %3421 = shalt.err (!%p3418_p0)
}
  0x24   :  { %39 = dma.hbm_to_vmem [thread:$0]  %s4138_s3, 16, %s37_s16, [#allocation5]  }
  0x25   :  { %s3430_s23 = scalar_lea.vmem %s61_s18, 16  ;;  %s3434_s9 = scalar_lea.vmem %s61_s18, 32 }
  0x26   :  { %p3431_p1 = scmp.ne.s32.totalorder %s61_s18, %s3430_s23  ;;  %p3435_p2 = scmp.lt.s32.totalorder %s61_s18, %s61_s18 }
  0x27   :  { %p3436_p3 = scmp.lt.s32.totalorder %s3434_s9, %s3430_s23 }
  0x29   :  { %p3437_p4 = por %p3436_p3, %p3435_p2 }
  0x2b   :  { %p3438_p5 = pnand %p3437_p4, %p3431_p1 }
  0x2d   :  { %3441 = shalt.err (!%p3438_p5)
}
  0x2e   :  { %63 = dma.hbm_to_vmem [thread:$0]  %s4142_s7, 16, %s61_s18, [#allocation7]  }
  0x2f   :  { %s3494_s25 = smov [#allocation11]  }
  0x30   :  { %s81_s26 = sshll.u32 %s3494_s25, 4  ;;  %s82_s26 = int_to_ptr.vmem [resolvable:$true] %s81_s26 }
  0x31   :  { %s3450_s27 = scalar_lea.vmem %s82_s26, 1024  ;;  %p3455_p7 = scmp.lt.s32.totalorder %s82_s26, %s82_s26 }
  0x32   :  { %p3451_p6 = scmp.ne.s32.totalorder %s82_s26, %s3450_s27  ;;  %p3456_p8 = scmp.lt.s32.totalorder %s3450_s27, %s3450_s27 }
  0x34   :  { %p3457_p9 = por %p3456_p8, %p3455_p7 }
  0x36   :  { %p3458_p10 = pnand %p3457_p9, %p3451_p6 }
  0x38   :  { %3461 = shalt.err (!%p3458_p10)
}
  0x39   :  { %s3495_s3 = smov 128   ;;  %s3496_s28 = smov 8  }
  0x3a   :  { %87 = dma.hbm_to_vmem [thread:$0]  %s4145_s10, 1024, %s82_s26, [#allocation10], %s3495_s3, %s3495_s3, %s3496_s28  }
  0x3b   :  { %s3497_s16 = smov [#allocation12]  }
  0x3c   :  { %s93_s17 = sshll.u32 %s3497_s16, 4  ;;  %s94_s17 = int_to_ptr.vmem [resolvable:$true] %s93_s17 }
  0x3d   :  { %s3470_s7 = scalar_lea.vmem %s94_s17, 1024  ;;  %p3475_p12 = scmp.lt.s32.totalorder %s94_s17, %s94_s17 }
  0x3e   :  { %p3471_p11 = scmp.ne.s32.totalorder %s94_s17, %s3470_s7  ;;  %p3476_p13 = scmp.lt.s32.totalorder %s3470_s7, %s3470_s7 }
  0x40   :  { %p3477_p0 = por %p3476_p13, %p3475_p12 }
  0x42   :  { %p3478_p1 = pnand %p3477_p0, %p3471_p11 }
  0x44   :  { %3481 = shalt.err (!%p3478_p1)
}
  0x45   :  { %99 = dma.hbm_to_vmem [thread:$0]  %s4146_s11, 1024, %s94_s17, [#allocation13], %s3495_s3, %s3495_s3, %s3496_s28  }
  0x46   :  { %3482 = dma.done.wait [#allocation5], 16  }
  0x47   :  { %3483 = vsyncadd [#allocation5], 4294967280 }
  0x48   :  { %3484 = dma.done.wait [#allocation7], 32  }
  0x49   :  { %3485 = vsyncadd [#allocation7], 4294967264 }
  0x4a   :  { %3486 = dma.done.wait [#allocation10], 1040  }
  0x4b   :  { %3487 = vsyncadd [#allocation10], 4294966256 }
  0x4c   :  { %3488 = dma.done.wait [#allocation13], 1024  }
  0x4d   :  { %3489 = vsyncadd [#allocation13], 4294966272  ;;  %v3498_v0 = vmov 0.0   ;;  %vm3499_vm0 = vmmov 0   ;;  %vm137_vm1 = vcmask 1044480   ;;  %vm133_vm2 = vcmask 39936  }
  0x4e   :  { %2928 = vmatprep.subr.mxu0 %v3498_v0  ;;  %2930 = vmatprep.mubr.msk.f32.mxu0 %vm3499_vm0, %v3498_v0  ;;  %v125_v1 = vld [vmem:[%s4137_s2] sm:$0x1f]  ;;  %v215_v3 = vld [vmem:[%s4139_s4 + $0x18] sm:$0xff]  ;;  %v214_v4 = vld [vmem:[%s4139_s4 + $0x10] sm:$0xff]  ;;  %vm428_vm3 = vcmask 1043456   ;;  %vm223_vm4 = vcmask 261120  }
  0x4f   :  { %2933 = vmatprep.subr.mxu1 %v3498_v0  ;;  %2941 = vmatprep.mubr.msk.f32.mxu1 %vm3499_vm0, %v3498_v0  ;;  %v124_v2 = vld [vmem:[%s4136_s1] sm:$0xff]  ;;  %v213_v5 = vld [vmem:[%s4139_s4 + $0x8] sm:$0xff]  ;;  %v305_v8 = vld [vmem:[%s4141_s6 + $0x38] sm:$0xff]  ;;  %vm403_vm5 = vcmask 31744   ;;  %vm313_vm6 = vcmask 523264   ;;  %s3500_s17 = smov 64  }
  0x50   :  { %2929 = vmatpush3.msk.msra.mxu0 %vm137_vm1, %v125_v1  ;;  %2934 = vmatpush3.msra.mxu1 %v215_v3  ;;  %v212_v6 = vld [vmem:[%s4139_s4] sm:$0xff]  ;;  %v304_v9 = vld [vmem:[%s4141_s6 + $0x30] sm:$0xff]  ;;  %v303_v10 = vld [vmem:[%s4141_s6 + $0x28] sm:$0xff]  ;;  %s3501_s7 = smov 96   ;;  %s3502_s18 = smov 32   ;;  %vm2693_vm7 = vcmask 23552  }
  0x51   :  { %2931 = vmatmul.mubr.msk.f32.vlgmr.msra.gmra.mxu0 %vm133_vm2, %v124_v2  ;;  %2935 = vmatprep.subr.mxu1 %v3498_v0  ;;  %v395_v7 = vld [vmem:[%s4143_s8] sm:$0xf]  ;;  %v301_v12 = vld [vmem:[%s4141_s6 + $0x18] sm:$0xff]  ;;  %v388_v19 = vld [vmem:[%s4135_s0 + $0x8] sm:$0xff] }
  0x52   :  { %2944 = vmatprep.subr.mxu0 %v3498_v0  ;;  %2960 = vmatprep.mubr.msk.f32.mxu0 %vm3499_vm0, %v3498_v0  ;;  %v302_v11 = vld [vmem:[%s4141_s6 + $0x20] sm:$0xff]  ;;  %v389_v20 = vld [vmem:[%s4135_s0 + $0x10] sm:$0xff]  ;;  %v390_v21 = vld [vmem:[%s4135_s0 + $0x18] sm:$0xff] }
  0x53   :  { %2936 = vmatpush3.msra.mxu1 %v214_v4  ;;  %2945 = vmatpush3.msra.mxu0 %v305_v8  ;;  %v2710_v13 = vld [vmem:[#allocation4] ss:$0 sm:$0xff]  ;;  %v392_v23 = vld [vmem:[%s4135_s0 + $0x28] sm:$0xff]  ;;  %v393_v24 = vld [vmem:[%s4135_s0 + $0x30] sm:$0xff] }
  0x54   :  { %2937 = vmatprep.subr.mxu1 %v3498_v0  ;;  %2946 = vmatprep.subr.mxu0 %v3498_v0  ;;  %v387_v18 = vld [vmem:[%s4135_s0] sm:$0xff]  ;;  %v394_v25 = vld [vmem:[%s4135_s0 + $0x38] sm:$0xff]  ;;  %v300_v26 = vld [vmem:[%s4141_s6 + $0x10] sm:$0xff] }
  0x55   :  { %2938 = vmatpush3.msra.mxu1 %v213_v5  ;;  %2947 = vmatpush3.msra.mxu0 %v304_v9  ;;  %v391_v22 = vld [vmem:[%s4135_s0 + $0x20] sm:$0xff]  ;;  %v299_v27 = vld [vmem:[%s4141_s6 + $0x8] sm:$0xff]  ;;  %v567_v30 = vld [vmem:[#allocation11 + $0x10] sm:$0xff] }
  0x56   :  { %2939 = vmatprep.subr.mxu1 %v3498_v0  ;;  %2948 = vmatprep.subr.mxu0 %v3498_v0  ;;  %v298_v28 = vld [vmem:[%s4141_s6] sm:$0xff]  ;;  %v566_v31 = vld [vmem:[#allocation11 + $0x8] sm:$0xff]  ;;  %v565_v32 = vld [vmem:[#allocation11] sm:$0xff] }
  0x57   :  { %2940 = vmatpush3.msra.mxu1 %v212_v6  ;;  %2949 = vmatpush3.msra.mxu0 %v303_v10  ;;  %v568_v29 = vld [vmem:[#allocation11 + $0x18] sm:$0xff]  ;;  %v3714_v5 = vld [vmem:[#allocation12 + $0x10] sm:$0xff]  ;;  %v3721_v6 = vld [vmem:[#allocation12 + $0x8] sm:$0xff] }
  0x58   :  { %2963 = vmatprep.subr.msk.mxu1 %vm428_vm3, %v395_v7  ;;  %2950 = vmatprep.subr.mxu0 %v3498_v0  ;;  %v2713_v33 = vld [vmem:[#allocation6] ss:$0 sm:$0xff]  ;;  %v2717_v37 = vld [vmem:[#allocation9] ss:$0 sm:$0xff] }
  0x59   :  { %2951 = vmatpush3.msra.mxu0 %v302_v11  ;;  %v3710_v1 = vld [vmem:[#allocation12 + $0x18] sm:$0xff]  ;;  %v3740_v11 = vld [vmem:[#allocation12] sm:$0xff] }
  0x5a   :  { %2952 = vmatprep.subr.mxu0 %v3498_v0 }
  0x5b   :  { %2953 = vmatpush3.msra.mxu0 %v301_v12  ;;  %v2715_v12 = vld [vmem:[#allocation8] ss:$0 sm:$0xff] }
  0x5c   :  { %2954 = vmatprep.subr.mxu0 %v3498_v0 }
  0x5d   :  { %2955 = vmatpush3.msra.mxu0 %v300_v26 }
  0x5e   :  { %2956 = vmatprep.subr.mxu0 %v3498_v0 }
  0x5f   :  { %2957 = vmatpush3.msra.mxu0 %v299_v27 }
  0x60   :  { %2958 = vmatprep.subr.mxu0 %v3498_v0 }
  0x61   :  { %2959 = vmatpush3.msra.mxu0 %v298_v28 }
  0x62   :  { %2977 = vmatprep.subr.mxu0 %v568_v29 }
 0x111   :  { %v207_v14 = vpop.f32.mrf.mxu0 }
 0x112   :  { %v208_v15 = vadd.f32 %v2710_v13, %v207_v14 }
 0x113   :  { %v2932_v16 = vpop.f32.mrf.mxu0 }
 0x114   :  { %v211_v17 = vmax.f32 %v208_v15, 0.0  ;;  %v3763_v16 = vld [vmem:[%s4147_s12] ss:$0 sm:$0xff] }
 0x116   :  { %2942 = vmatmul.mubr.msk.f32.vlgmr.msra.gmra.mxu1 %vm223_vm4, %v211_v17 }
 0x117   :  { %2964 = vmatpush3.msk.msra.mxu1 %vm428_vm3, %v395_v7  ;;  %2965 = vmatprep.mubr.msk.f32.mxu1 %vm403_vm5, %v387_v18 }
 0x118   :  { %3213 = vmatprep.subr.mxu1 %v568_v29 }
 0x11a   :  { %2966 = vmatmul.mubr.msk.f32.vlgmr.msra.gmra.mxu1 %vm403_vm5, %v388_v19 }
 0x11b   :  { %2968 = vmatprep.mubr.msk.f32.mxu1 %vm403_vm5, %v389_v20  ;;  %3217 = vmatpush3.msra.mxu1 %v568_v29 }
 0x11c   :  { %3214 = vmatprep.subr.mxu1 %v567_v30 }
 0x11d   :  { %3218 = vmatpush3.msra.mxu1 %v567_v30 }
 0x11e   :  { %2969 = vmatmul.mubr.msk.f32.gmra.mxu1 %vm403_vm5, %v390_v21  ;;  %3215 = vmatprep.subr.mxu1 %v566_v31 }
 0x11f   :  { %2971 = vmatprep.mubr.msk.f32.mxu1 %vm403_vm5, %v391_v22  ;;  %3219 = vmatpush3.msra.mxu1 %v566_v31 }
 0x120   :  { %3216 = vmatprep.subr.mxu1 %v565_v32 }
 0x121   :  { %3220 = vmatpush3.msra.mxu1 %v565_v32 }
 0x122   :  { %2972 = vmatmul.mubr.msk.f32.gmra.mxu1 %vm403_vm5, %v392_v23  ;;  %2997 = vmatprep.subr.mxu1 %v3498_v0 }
 0x123   :  { %2974 = vmatprep.mubr.msk.f32.mxu1 %vm403_vm5, %v393_v24 }
 0x126   :  { %2975 = vmatmul.mubr.msk.f32.gmra.mxu1 %vm403_vm5, %v394_v25 }
 0x1d6   :  { %v293_v34 = vpop.f32.mrf.mxu1 }
 0x1d7   :  { %v294_v35 = vadd.f32 %v2713_v33, %v293_v34 }
 0x1d8   :  { %v2943_v36 = vpop.f32.mrf.mxu1 }
 0x1d9   :  { %v297_v38 = vmax.f32 %v294_v35, 0.0 }
 0x1da   :  { %v2967_v39 = vpop.f32.mrf.mxu1 }
 0x1db   :  { %2961 = vmatmul.mubr.msk.f32.vlgmr.msra.gmra.mxu0 %vm313_vm6, %v297_v38  ;;  %v504_v40 = vadd.f32 %v2967_v39, %v2717_v37 }
 0x1dc   :  { %v498_v41 = vpop.f32.mrf.mxu1  ;;  %2978 = vmatpush3.msra.mxu0 %v568_v29 }
 0x1dd   :  { %v538_v42 = vmax.f32 %v504_v40, 0.0  ;;  %v499_v43 = vadd.f32 %v2717_v37, %v498_v41  ;;  %2979 = vmatprep.subr.mxu0 %v567_v30 }
 0x1de   :  { %v2970_v44 = vpop.f32.mrf.mxu1  ;;  %2980 = vmatpush3.msra.mxu0 %v567_v30 }
 0x1df   :  { %546 = vst.msk [vmem:[#allocation2 + $0x8] sm:$0xff] %vm223_vm4, %v538_v42  ;;  %v537_v45 = vmax.f32 %v499_v43, 0.0  ;;  %v514_v46 = vadd.f32 %v2970_v44, %v2717_v37  ;;  %2981 = vmatprep.subr.mxu0 %v566_v31 }
 0x1e0   :  { %v508_v47 = vpop.f32.mrf.mxu1  ;;  %2982 = vmatpush3.msra.mxu0 %v566_v31 }
 0x1e1   :  { %545 = vst.msk [vmem:[#allocation2] sm:$0xff] %vm223_vm4, %v537_v45  ;;  %v540_v48 = vmax.f32 %v514_v46, 0.0  ;;  %v509_v49 = vadd.f32 %v2717_v37, %v508_v47  ;;  %2983 = vmatprep.subr.mxu0 %v565_v32 }
 0x1e2   :  { %v2973_v50 = vpop.f32.mrf.mxu1  ;;  %2984 = vmatpush3.msra.mxu0 %v565_v32 }
 0x1e3   :  { %548 = vst.msk [vmem:[#allocation2 + $0x18] sm:$0xff] %vm223_vm4, %v540_v48  ;;  %v539_v51 = vmax.f32 %v509_v49, 0.0  ;;  %v524_v52 = vadd.f32 %v2973_v50, %v2717_v37  ;;  %3019 = vmatprep.subr.mxu0 %v3498_v0 }
 0x1e4   :  { %v518_v53 = vpop.f32.mrf.mxu1 }
 0x1e5   :  { %547 = vst.msk [vmem:[#allocation2 + $0x10] sm:$0xff] %vm223_vm4, %v539_v51  ;;  %v542_v54 = vmax.f32 %v524_v52, 0.0  ;;  %v519_v55 = vadd.f32 %v2717_v37, %v518_v53 }
 0x1e6   :  { %v2976_v56 = vpop.f32.mrf.mxu1  ;;  %v558_v59 = vld [vmem:[#allocation2 + $0x8] sm:$0xff] }
 0x1e7   :  { %550 = vst.msk [vmem:[#allocation2 + $0x28] sm:$0xff] %vm223_vm4, %v542_v54  ;;  %v541_v57 = vmax.f32 %v519_v55, 0.0  ;;  %v534_v58 = vadd.f32 %v2976_v56, %v2717_v37 }
 0x1e8   :  { %v528_v60 = vpop.f32.mrf.mxu1  ;;  %v557_v61 = vld [vmem:[#allocation2] sm:$0xff] }
 0x1e9   :  { %549 = vst.msk [vmem:[#allocation2 + $0x20] sm:$0xff] %vm223_vm4, %v541_v57  ;;  %v544_v62 = vmax.f32 %v534_v58, 0.0  ;;  %v529_v63 = vadd.f32 %v2717_v37, %v528_v60  ;;  %2985 = vmatprep.mubr.msk.f32.mxu0 %vm223_vm4, %v557_v61 }
 0x1ea   :  { %2986 = vmatmul.mubr.msk.f32.vlgmr.msra.gmra.mxu0 %vm223_vm4, %v558_v59  ;;  %v560_v3 = vld [vmem:[#allocation2 + $0x18] sm:$0xff] }
 0x1eb   :  { %552 = vst.msk [vmem:[#allocation2 + $0x38] sm:$0xff] %vm223_vm4, %v544_v62  ;;  %v543_v2 = vmax.f32 %v529_v63, 0.0  ;;  %3020 = vmatpush3.msra.mxu0 %v3710_v1 }
 0x1ec   :  { %v559_v4 = vld [vmem:[#allocation2 + $0x10] sm:$0xff]  ;;  %3021 = vmatprep.subr.mxu0 %v3498_v0 }
 0x1ed   :  { %551 = vst.msk [vmem:[#allocation2 + $0x30] sm:$0xff] %vm223_vm4, %v543_v2  ;;  %2988 = vmatprep.mubr.msk.f32.mxu0 %vm223_vm4, %v559_v4  ;;  %3022 = vmatpush3.msra.mxu0 %v3714_v5 }
 0x1ee   :  { %2989 = vmatmul.mubr.msk.f32.gmra.mxu0 %vm223_vm4, %v560_v3  ;;  %3023 = vmatprep.subr.mxu0 %v3498_v0  ;;  %v562_v7 = vld [vmem:[#allocation2 + $0x28] sm:$0xff] }
 0x1ef   :  { %3024 = vmatpush3.msra.mxu0 %v3721_v6  ;;  %3027 = vmatprep.mubr.msk.f32.mxu0 %vm3499_vm0, %v3498_v0 }
 0x1f0   :  { %v561_v8 = vld [vmem:[#allocation2 + $0x20] sm:$0xff]  ;;  %3025 = vmatprep.subr.mxu0 %v3498_v0 }
 0x1f1   :  { %2991 = vmatprep.mubr.msk.f32.mxu1 %vm223_vm4, %v561_v8  ;;  %3026 = vmatpush3.msra.mxu0 %v3740_v11 }
 0x1f2   :  { %2992 = vmatmul.mubr.msk.f32.vlgmr.msra.gmra.mxu1 %vm223_vm4, %v562_v7  ;;  %v564_v9 = vld [vmem:[#allocation2 + $0x38] sm:$0xff]  ;;  %3041 = vmatprep.subr.mxu0 %v3498_v0 }
 0x1f3   :  { %2998 = vmatpush3.msra.mxu1 %v3710_v1 }
 0x1f4   :  { %v563_v10 = vld [vmem:[#allocation2 + $0x30] sm:$0xff]  ;;  %2999 = vmatprep.subr.mxu1 %v3498_v0 }
 0x1f5   :  { %2994 = vmatprep.mubr.msk.f32.mxu1 %vm223_vm4, %v563_v10  ;;  %3000 = vmatpush3.msra.mxu1 %v3714_v5 }
 0x1f6   :  { %2995 = vmatmul.mubr.msk.f32.gmra.mxu1 %vm223_vm4, %v564_v9  ;;  %3001 = vmatprep.subr.mxu1 %v3498_v0 }
 0x1f7   :  { %3002 = vmatpush3.msra.mxu1 %v3721_v6  ;;  %3005 = vmatprep.mubr.msk.f32.mxu1 %vm3499_vm0, %v3498_v0 }
 0x1f8   :  { %3003 = vmatprep.subr.mxu1 %v3498_v0 }
 0x1f9   :  { %3004 = vmatpush3.msra.mxu1 %v3740_v11 }
 0x1fa   :  { %3008 = vmatprep.subr.mxu1 %v3498_v0 }
 0x29b   :  { %v383_v13 = vpop.f32.mrf.mxu0 }
 0x29c   :  { %v3746_v14 = vadd.f32 %v2715_v12, %v383_v13 }
 0x29d   :  { %v2962_v15 = vpop.f32.mrf.mxu0 }
 0x29e   :  { %3006 = vmatmul.mubr.msk.f32.vlgmr.msra.gmra.mxu1 %vm223_vm4, %v3746_v14 }
 0x29f   :  { %3009 = vmatpush3.msra.mxu1 %v3710_v1  ;;  %3016 = vmatprep.mubr.msk.f32.mxu1 %vm3499_vm0, %v3498_v0 }
 0x2a0   :  { %3010 = vmatprep.subr.mxu1 %v3498_v0 }
 0x2a1   :  { %3011 = vmatpush3.msra.mxu1 %v3714_v5 }
 0x2a2   :  { %3012 = vmatprep.subr.mxu1 %v3498_v0 }
 0x2a3   :  { %3013 = vmatpush3.msra.mxu1 %v3721_v6 }
 0x2a4   :  { %3014 = vmatprep.subr.mxu1 %v3498_v0 }
 0x2a5   :  { %3015 = vmatpush3.msra.mxu1 %v3740_v11 }
 0x2a6   :  { %3030 = vmatprep.subr.mxu1 %v3498_v0 }
 0x2aa   :  { %v2987_v17 = vpop.f32.mrf.mxu0 }
 0x2ab   :  { %v672_v18 = vadd.f32 %v2987_v17, %v3763_v16 }
 0x2ac   :  { %v666_v19 = vpop.f32.mrf.mxu0 }
 0x2ad   :  { %v667_v29 = vadd.f32 %v3763_v16, %v666_v19 }
 0x2ae   :  { %v2990_v20 = vpop.f32.mrf.mxu0 }
 0x2af   :  { %v3767_v21 = vadd.f32 %v2990_v20, %v3763_v16 }
 0x2b0   :  { %v676_v3 = vpop.f32.mrf.mxu0 }
 0x2b1   :  { %v677_v4 = vadd.f32 %v3763_v16, %v676_v3 }
 0x2b2   :  { %v2993_v22 = vpop.f32.mrf.mxu1 }
 0x2b3   :  { %v3770_v23 = vadd.f32 %v2993_v22, %v3763_v16 }
 0x2b4   :  { %v686_v24 = vpop.f32.mrf.mxu1 }
 0x2b5   :  { %v3773_v25 = vadd.f32 %v3763_v16, %v686_v24 }
 0x2b6   :  { %v2996_v26 = vpop.f32.mrf.mxu1 }
 0x2b7   :  { %v3776_v27 = vadd.f32 %v2996_v26, %v3763_v16 }
 0x2b8   :  { %v3778_v28 = vpop.f32.mrf.mxu1 }
 0x35e   :  { %v783_v30 = vpop.f32.mrf.mxu1 }
 0x35f   :  { %v787_v31 = vadd.f32 %v783_v30, %v667_v29 }
 0x360   :  { %v3007_v32 = vpop.f32.mrf.mxu1 }
 0x361   :  { %3234 = vtanh.f32 %v787_v31  ;;  %v2737_v34 = vmul.f32 -1.442695, %v787_v31 }
 0x363   :  { %3236 = vpow2.f32 %v2737_v34 }
 0x36e   :  { %v3235_v33 = vpop.eup %3234 }
 0x36f   :  { %800 = vrot.lane.b32.xlu0 %v3235_v33, %s3500_s17 }
 0x370   :  { %v3237_v35 = vpop.eup %3236 }
 0x371   :  { %v791_v36 = vadd.f32 1.0, %v3237_v35 }
 0x373   :  { %795 = vrot.lane.b32.xlu0 %v3746_v14, %s3501_s7  ;;  %3238 = vrcp.f32 %v791_v36 }
 0x380   :  { %v3239_v37 = vpop.eup %3238 }
 0x3e1   :  { %v801_v38 = vpop.permute.xlu0 %800 }
 0x3e2   :  { %v803_v39 = vmul.f32 %v3239_v37, %v801_v38 }
 0x3e4   :  { %805 = vrot.lane.b32.xlu1 %v803_v39, %s3502_s18 }
 0x3e5   :  { %v3784_v40 = vpop.permute.xlu0 %795 }
 0x3e6   :  { %v798_v41 = vmul.f32 %v3239_v37, %v3784_v40 }
 0x456   :  { %v806_v42 = vpop.permute.xlu1 %805 }
 0x457   :  { %v808_v43 = vadd.f32 %v806_v42, %v798_v41 }
 0x459   :  { %3240 = vtanh.f32 %v808_v43 }
 0x466   :  { %v3241_v44 = vpop.eup %3240 }
 0x467   :  { %811 = vrot.lane.b32.xlu1 %v3241_v44, %s3500_s17 }
 0x4d9   :  { %v812_v45 = vpop.permute.xlu1 %811 }
 0x4da   :  { %v814_v46 = vmul.f32 %v3239_v37, %v812_v45 }
 0x4dc   :  { %816 = vrot.lane.b32.xlu0 %v814_v46, %s3502_s18 }
 0x54e   :  { %v817_v47 = vpop.permute.xlu0 %816 }
 0x54f   :  { %819 = vst.msk [vmem:[#allocation2] sm:$0xff] %vm223_vm4, %v817_v47  ;;  %3017 = vmatmul.mubr.msk.f32.vlgmr.msra.gmra.mxu1 %vm223_vm4, %v817_v47 }
 0x550   :  { %3031 = vmatpush3.msra.mxu1 %v3710_v1  ;;  %3038 = vmatprep.mubr.msk.f32.mxu1 %vm3499_vm0, %v3498_v0 }
 0x551   :  { %3032 = vmatprep.subr.mxu1 %v3498_v0 }
 0x552   :  { %3033 = vmatpush3.msra.mxu1 %v3714_v5 }
 0x553   :  { %3034 = vmatprep.subr.mxu1 %v3498_v0 }
 0x554   :  { %3035 = vmatpush3.msra.mxu1 %v3721_v6 }
 0x555   :  { %3036 = vmatprep.subr.mxu1 %v3498_v0 }
 0x556   :  { %3037 = vmatpush3.msra.mxu1 %v3740_v11 }
 0x557   :  { %3052 = vmatprep.subr.mxu1 %v3498_v0 }
 0x60f   :  { %v890_v48 = vpop.f32.mrf.mxu1 }
 0x610   :  { %v894_v49 = vadd.f32 %v890_v48, %v672_v18 }
 0x611   :  { %v3018_v50 = vpop.f32.mrf.mxu1 }
 0x612   :  { %3242 = vtanh.f32 %v894_v49  ;;  %v2739_v52 = vmul.f32 -1.442695, %v894_v49 }
 0x614   :  { %3244 = vpow2.f32 %v2739_v52 }
 0x61f   :  { %v3243_v51 = vpop.eup %3242 }
 0x620   :  { %904 = vrot.lane.b32.xlu1 %v3243_v51, %s3500_s17 }
 0x621   :  { %v3245_v53 = vpop.eup %3244 }
 0x622   :  { %v898_v54 = vadd.f32 1.0, %v3245_v53 }
 0x624   :  { %3246 = vrcp.f32 %v898_v54 }
 0x631   :  { %v3247_v55 = vpop.eup %3246 }
 0x632   :  { %v902_v58 = vmul.f32 %v3247_v55, %v808_v43 }
 0x692   :  { %v905_v56 = vpop.permute.xlu1 %904 }
 0x693   :  { %v907_v57 = vmul.f32 %v3247_v55, %v905_v56 }
 0x695   :  { %909 = vrot.lane.b32.xlu0 %v907_v57, %s3502_s18 }
 0x707   :  { %v910_v59 = vpop.permute.xlu0 %909 }
 0x708   :  { %v912_v60 = vadd.f32 %v910_v59, %v902_v58 }
 0x70a   :  { %3248 = vtanh.f32 %v912_v60 }
 0x717   :  { %v3249_v61 = vpop.eup %3248 }
 0x718   :  { %915 = vrot.lane.b32.xlu1 %v3249_v61, %s3500_s17 }
 0x78a   :  { %v916_v62 = vpop.permute.xlu1 %915 }
 0x78b   :  { %v918_v63 = vmul.f32 %v3247_v55, %v916_v62 }
 0x78d   :  { %920 = vrot.lane.b32.xlu0 %v918_v63, %s3502_s18 }
 0x7ff   :  { %v921_v2 = vpop.permute.xlu0 %920 }
 0x800   :  { %924 = vst.msk [vmem:[#allocation2 + $0x8] sm:$0xff] %vm223_vm4, %v921_v2  ;;  %3028 = vmatmul.mubr.msk.f32.vlgmr.msra.gmra.mxu0 %vm223_vm4, %v921_v2 }
 0x801   :  { %3042 = vmatpush3.msra.mxu0 %v3710_v1  ;;  %3049 = vmatprep.mubr.msk.f32.mxu0 %vm3499_vm0, %v3498_v0 }
 0x802   :  { %3043 = vmatprep.subr.mxu0 %v3498_v0 }
 0x803   :  { %3044 = vmatpush3.msra.mxu0 %v3714_v5 }
 0x804   :  { %3045 = vmatprep.subr.mxu0 %v3498_v0 }
 0x805   :  { %3046 = vmatpush3.msra.mxu0 %v3721_v6 }
 0x806   :  { %3047 = vmatprep.subr.mxu0 %v3498_v0 }
 0x807   :  { %3048 = vmatpush3.msra.mxu0 %v3740_v11 }
 0x808   :  { %3063 = vmatprep.subr.mxu0 %v3498_v0 }
 0x8c0   :  { %v995_v7 = vpop.f32.mrf.mxu0 }
 0x8c1   :  { %v999_v8 = vadd.f32 %v995_v7, %v677_v4 }
 0x8c2   :  { %v3029_v9 = vpop.f32.mrf.mxu0 }
 0x8c3   :  { %3250 = vtanh.f32 %v999_v8  ;;  %v2741_v12 = vmul.f32 -1.442695, %v999_v8 }
 0x8c5   :  { %3252 = vpow2.f32 %v2741_v12 }
 0x8d0   :  { %v3251_v10 = vpop.eup %3250 }
 0x8d1   :  { %1009 = vrot.lane.b32.xlu1 %v3251_v10, %s3500_s17 }
 0x8d2   :  { %v3253_v13 = vpop.eup %3252 }
 0x8d3   :  { %v1003_v15 = vadd.f32 1.0, %v3253_v13 }
 0x8d5   :  { %3254 = vrcp.f32 %v1003_v15 }
 0x8e2   :  { %v3255_v17 = vpop.eup %3254 }
 0x8e3   :  { %v1007_v20 = vmul.f32 %v3255_v17, %v912_v60 }
 0x943   :  { %v1010_v18 = vpop.permute.xlu1 %1009 }
 0x944   :  { %v1012_v19 = vmul.f32 %v3255_v17, %v1010_v18 }
 0x946   :  { %1014 = vrot.lane.b32.xlu0 %v1012_v19, %s3502_s18 }
 0x9b8   :  { %v1015_v22 = vpop.permute.xlu0 %1014 }
 0x9b9   :  { %v1017_v24 = vadd.f32 %v1015_v22, %v1007_v20  ;;  %v1571_v22 = vld [vmem:[#allocation11 + $0x30] sm:$0xff] }
 0x9bb   :  { %3256 = vtanh.f32 %v1017_v24 }
 0x9c8   :  { %v3257_v26 = vpop.eup %3256 }
 0x9c9   :  { %1020 = vrot.lane.b32.xlu1 %v3257_v26, %s3500_s17  ;;  %v1570_v26 = vld [vmem:[#allocation11 + $0x28] sm:$0xff] }
 0xa3b   :  { %v1021_v29 = vpop.permute.xlu1 %1020 }
 0xa3c   :  { %v1023_v30 = vmul.f32 %v3255_v17, %v1021_v29  ;;  %v1569_v29 = vld [vmem:[#allocation11 + $0x20] sm:$0xff] }
 0xa3e   :  { %1025 = vrot.lane.b32.xlu0 %v1023_v30, %s3502_s18  ;;  %v1561_v30 = vld [vmem:[#allocation2 + $0x8] sm:$0xff] }
 0xab0   :  { %v1026_v31 = vpop.permute.xlu0 %1025 }
 0xab1   :  { %1029 = vst.msk [vmem:[#allocation2 + $0x10] sm:$0xff] %vm223_vm4, %v1026_v31  ;;  %3039 = vmatmul.mubr.msk.f32.vlgmr.msra.gmra.mxu1 %vm223_vm4, %v1026_v31 }
 0xab2   :  { %3053 = vmatpush3.msra.mxu1 %v3710_v1  ;;  %3060 = vmatprep.mubr.msk.f32.mxu1 %vm3499_vm0, %v3498_v0 }
 0xab3   :  { %3054 = vmatprep.subr.mxu1 %v3498_v0 }
 0xab4   :  { %3055 = vmatpush3.msra.mxu1 %v3714_v5 }
 0xab5   :  { %3056 = vmatprep.subr.mxu1 %v3498_v0 }
 0xab6   :  { %3057 = vmatpush3.msra.mxu1 %v3721_v6 }
 0xab7   :  { %3058 = vmatprep.subr.mxu1 %v3498_v0 }
 0xab8   :  { %3059 = vmatpush3.msra.mxu1 %v3740_v11  ;;  %v1562_v31 = vld [vmem:[#allocation2 + $0x10] sm:$0xff] }
 0xab9   :  { %3074 = vmatprep.subr.mxu1 %v3498_v0 }
 0xb71   :  { %v1100_v32 = vpop.f32.mrf.mxu1 }
 0xb72   :  { %v1104_v33 = vadd.f32 %v1100_v32, %v3767_v21 }
 0xb73   :  { %v3040_v34 = vpop.f32.mrf.mxu1 }
 0xb74   :  { %3258 = vtanh.f32 %v1104_v33  ;;  %v2743_v36 = vmul.f32 -1.442695, %v1104_v33 }
 0xb76   :  { %3260 = vpow2.f32 %v2743_v36 }
 0xb81   :  { %v3259_v35 = vpop.eup %3258 }
 0xb82   :  { %1114 = vrot.lane.b32.xlu1 %v3259_v35, %s3500_s17  ;;  %v697_v35 = vadd.f32 %v3763_v16, %v3778_v28 }
 0xb83   :  { %v3261_v37 = vpop.eup %3260 }
 0xb84   :  { %v1108_v38 = vadd.f32 1.0, %v3261_v37 }
 0xb86   :  { %3262 = vrcp.f32 %v1108_v38 }
 0xb93   :  { %v3263_v39 = vpop.eup %3262 }
 0xb94   :  { %v1112_v43 = vmul.f32 %v3263_v39, %v1017_v24  ;;  %v1560_v24 = vld [vmem:[#allocation2] sm:$0xff] }
 0xbf4   :  { %v1115_v41 = vpop.permute.xlu1 %1114 }
 0xbf5   :  { %v1117_v42 = vmul.f32 %v3263_v39, %v1115_v41 }
 0xbf7   :  { %1119 = vrot.lane.b32.xlu0 %v1117_v42, %s3502_s18 }
 0xc69   :  { %v1120_v44 = vpop.permute.xlu0 %1119 }
 0xc6a   :  { %v1122_v45 = vadd.f32 %v1120_v44, %v1112_v43 }
 0xc6c   :  { %3264 = vtanh.f32 %v1122_v45 }
 0xc79   :  { %v3265_v21 = vpop.eup %3264 }
 0xc7a   :  { %1125 = vrot.lane.b32.xlu1 %v3265_v21, %s3500_s17 }
 0xcec   :  { %v1126_v46 = vpop.permute.xlu1 %1125 }
 0xced   :  { %v1128_v47 = vmul.f32 %v3263_v39, %v1126_v46 }
 0xcef   :  { %1130 = vrot.lane.b32.xlu0 %v1128_v47, %s3502_s18 }
 0xd61   :  { %v1131_v48 = vpop.permute.xlu0 %1130 }
 0xd62   :  { %1134 = vst.msk [vmem:[#allocation2 + $0x18] sm:$0xff] %vm223_vm4, %v1131_v48  ;;  %3050 = vmatmul.mubr.msk.f32.vlgmr.msra.gmra.mxu0 %vm223_vm4, %v1131_v48  ;;  %v3889_v48 = vld [vmem:[#allocation12 + $0x38] sm:$0xff] }
 0xd63   :  { %3064 = vmatpush3.msra.mxu0 %v3710_v1  ;;  %3071 = vmatprep.mubr.msk.f32.mxu0 %vm3499_vm0, %v3498_v0 }
 0xd64   :  { %3065 = vmatprep.subr.mxu0 %v3498_v0 }
 0xd65   :  { %3066 = vmatpush3.msra.mxu0 %v3714_v5 }
 0xd66   :  { %3067 = vmatprep.subr.mxu0 %v3498_v0 }
 0xd67   :  { %3068 = vmatpush3.msra.mxu0 %v3721_v6 }
 0xd68   :  { %3069 = vmatprep.subr.mxu0 %v3498_v0 }
 0xd69   :  { %3070 = vmatpush3.msra.mxu0 %v3740_v11  ;;  %v1563_v32 = vld [vmem:[#allocation2 + $0x18] sm:$0xff] }
 0xe22   :  { %v1205_v49 = vpop.f32.mrf.mxu0 }
 0xe23   :  { %v1209_v50 = vadd.f32 %v1205_v49, %v3773_v25  ;;  %v3892_v49 = vld [vmem:[#allocation12 + $0x30] sm:$0xff] }
 0xe24   :  { %v3051_v51 = vpop.f32.mrf.mxu0 }
 0xe25   :  { %3266 = vtanh.f32 %v1209_v50  ;;  %v2745_v53 = vmul.f32 -1.442695, %v1209_v50  ;;  %v3896_v50 = vld [vmem:[#allocation12 + $0x28] sm:$0xff]  ;;  %v3900_v51 = vld [vmem:[#allocation12 + $0x20] sm:$0xff] }
 0xe27   :  { %3268 = vpow2.f32 %v2745_v53 }
 0xe32   :  { %v3267_v52 = vpop.eup %3266 }
 0xe33   :  { %1219 = vrot.lane.b32.xlu1 %v3267_v52, %s3500_s17 }
 0xe34   :  { %v3269_v54 = vpop.eup %3268 }
 0xe35   :  { %v1213_v55 = vadd.f32 1.0, %v3269_v54 }
 0xe37   :  { %3270 = vrcp.f32 %v1213_v55 }
 0xe44   :  { %v3271_v56 = vpop.eup %3270 }
 0xe45   :  { %v1217_v59 = vmul.f32 %v3271_v56, %v1122_v45 }
 0xea5   :  { %v1220_v57 = vpop.permute.xlu1 %1219 }
 0xea6   :  { %v1222_v58 = vmul.f32 %v3271_v56, %v1220_v57 }
 0xea8   :  { %1224 = vrot.lane.b32.xlu0 %v1222_v58, %s3502_s18 }
 0xf1a   :  { %v1225_v60 = vpop.permute.xlu0 %1224 }
 0xf1b   :  { %v1227_v61 = vadd.f32 %v1225_v60, %v1217_v59  ;;  %v3939_v59 = vld [vmem:[%s4147_s12 + $0x1] ss:$0 sm:$0xff] }
 0xf1d   :  { %3272 = vtanh.f32 %v1227_v61 }
 0xf2a   :  { %v3273_v25 = vpop.eup %3272 }
 0xf2b   :  { %1230 = vrot.lane.b32.xlu1 %v3273_v25, %s3500_s17 }
 0xf9d   :  { %v1231_v62 = vpop.permute.xlu1 %1230 }
 0xf9e   :  { %v1233_v63 = vmul.f32 %v3271_v56, %v1231_v62 }
 0xfa0   :  { %1235 = vrot.lane.b32.xlu0 %v1233_v63, %s3502_s18 }
0x1012   :  { %v1236_v2 = vpop.permute.xlu0 %1235 }
0x1013   :  { %1239 = vst.msk [vmem:[#allocation2 + $0x20] sm:$0xff] %vm223_vm4, %v1236_v2  ;;  %3061 = vmatmul.mubr.msk.f32.vlgmr.msra.gmra.mxu1 %vm223_vm4, %v1236_v2 }
0x1014   :  { %3075 = vmatpush3.msra.mxu1 %v3710_v1  ;;  %3082 = vmatprep.mubr.msk.f32.mxu1 %vm3499_vm0, %v3498_v0 }
0x1015   :  { %3076 = vmatprep.subr.mxu1 %v3498_v0 }
0x1016   :  { %3077 = vmatpush3.msra.mxu1 %v3714_v5 }
0x1017   :  { %3078 = vmatprep.subr.mxu1 %v3498_v0 }
0x1018   :  { %3079 = vmatpush3.msra.mxu1 %v3721_v6 }
0x1019   :  { %3080 = vmatprep.subr.mxu1 %v3498_v0 }
0x101a   :  { %3081 = vmatpush3.msra.mxu1 %v3740_v11  ;;  %v1564_v33 = vld [vmem:[#allocation2 + $0x20] sm:$0xff] }
0x101b   :  { %3105 = vmatprep.subr.mxu1 %v3498_v0 }
0x10d3   :  { %v1310_v3 = vpop.f32.mrf.mxu1 }
0x10d4   :  { %v1314_v1 = vadd.f32 %v1310_v3, %v3770_v23  ;;  %v1572_v23 = vld [vmem:[#allocation11 + $0x38] sm:$0xff] }
0x10d5   :  { %v3062_v4 = vpop.f32.mrf.mxu1  ;;  %3085 = vmatprep.subr.mxu0 %v1572_v23 }
0x10d6   :  { %3274 = vtanh.f32 %v1314_v1  ;;  %v2747_v8 = vmul.f32 -1.442695, %v1314_v1 }
0x10d8   :  { %3276 = vpow2.f32 %v2747_v8 }
0x10e3   :  { %v3275_v7 = vpop.eup %3274 }
0x10e4   :  { %1324 = vrot.lane.b32.xlu1 %v3275_v7, %s3500_s17 }
0x10e5   :  { %v3277_v5 = vpop.eup %3276 }
0x10e6   :  { %v1318_v9 = vadd.f32 1.0, %v3277_v5 }
0x10e8   :  { %3278 = vrcp.f32 %v1318_v9 }
0x10f5   :  { %v3279_v6 = vpop.eup %3278 }
0x10f6   :  { %v1322_v11 = vmul.f32 %v3279_v6, %v1227_v61 }
0x1156   :  { %v1325_v10 = vpop.permute.xlu1 %1324 }
0x1157   :  { %v1327_v12 = vmul.f32 %v3279_v6, %v1325_v10 }
0x1159   :  { %1329 = vrot.lane.b32.xlu0 %v1327_v12, %s3502_s18 }
0x11cb   :  { %v1330_v13 = vpop.permute.xlu0 %1329 }
0x11cc   :  { %v1332_v15 = vadd.f32 %v1330_v13, %v1322_v11 }
0x11ce   :  { %3280 = vtanh.f32 %v1332_v15 }
0x11db   :  { %v3281_v17 = vpop.eup %3280 }
0x11dc   :  { %1335 = vrot.lane.b32.xlu1 %v3281_v17, %s3500_s17 }
0x124e   :  { %v1336_v18 = vpop.permute.xlu1 %1335 }
0x124f   :  { %v1338_v19 = vmul.f32 %v3279_v6, %v1336_v18 }
0x1251   :  { %1340 = vrot.lane.b32.xlu0 %v1338_v19, %s3502_s18 }
0x12c3   :  { %v1341_v20 = vpop.permute.xlu0 %1340 }
0x12c4   :  { %1344 = vst.msk [vmem:[#allocation2 + $0x28] sm:$0xff] %vm223_vm4, %v1341_v20  ;;  %3072 = vmatmul.mubr.msk.f32.vlgmr.msra.gmra.mxu0 %vm223_vm4, %v1341_v20 }
0x12c5   :  { %3086 = vmatpush3.msra.mxu0 %v1572_v23  ;;  %3093 = vmatprep.mubr.msk.f32.mxu0 %vm223_vm4, %v1560_v24 }
0x12c6   :  { %3087 = vmatprep.subr.mxu0 %v1571_v22 }
0x12c7   :  { %3088 = vmatpush3.msra.mxu0 %v1571_v22 }
0x12c8   :  { %3089 = vmatprep.subr.mxu0 %v1570_v26 }
0x12c9   :  { %3090 = vmatpush3.msra.mxu0 %v1570_v26 }
0x12ca   :  { %3091 = vmatprep.subr.mxu0 %v1569_v29 }
0x12cb   :  { %3092 = vmatpush3.msra.mxu0 %v1569_v29  ;;  %v1565_v34 = vld [vmem:[#allocation2 + $0x28] sm:$0xff] }
0x12cc   :  { %3094 = vmatmul.mubr.msk.f32.vlgmr.msra.gmra.mxu0 %vm223_vm4, %v1561_v30  ;;  %3127 = vmatprep.subr.mxu0 %v3498_v0 }
0x12cd   :  { %3096 = vmatprep.mubr.msk.f32.mxu0 %vm223_vm4, %v1562_v31  ;;  %3128 = vmatpush3.msra.mxu0 %v3889_v48 }
0x12ce   :  { %3129 = vmatprep.subr.mxu0 %v3498_v0 }
0x12cf   :  { %3130 = vmatpush3.msra.mxu0 %v3892_v49 }
0x12d0   :  { %3097 = vmatmul.mubr.msk.f32.gmra.mxu0 %vm223_vm4, %v1563_v32  ;;  %3131 = vmatprep.subr.mxu0 %v3498_v0 }
0x12d1   :  { %3099 = vmatprep.mubr.msk.f32.mxu0 %vm223_vm4, %v1564_v33  ;;  %3132 = vmatpush3.msra.mxu0 %v3896_v50 }
0x12d2   :  { %3133 = vmatprep.subr.mxu0 %v3498_v0 }
0x12d3   :  { %3134 = vmatpush3.msra.mxu0 %v3900_v51 }
0x12d4   :  { %3100 = vmatmul.mubr.msk.f32.gmra.mxu0 %vm223_vm4, %v1565_v34  ;;  %3149 = vmatprep.subr.mxu0 %v3498_v0 }
0x1384   :  { %v1415_v36 = vpop.f32.mrf.mxu0 }
0x1385   :  { %v1419_v37 = vadd.f32 %v1415_v36, %v697_v35 }
0x1386   :  { %v3073_v38 = vpop.f32.mrf.mxu0 }
0x1387   :  { %3282 = vtanh.f32 %v1419_v37  ;;  %v2749_v41 = vmul.f32 -1.442695, %v1419_v37 }
0x1389   :  { %3284 = vpow2.f32 %v2749_v41 }
0x1394   :  { %v3283_v39 = vpop.eup %3282 }
0x1395   :  { %1429 = vrot.lane.b32.xlu1 %v3283_v39, %s3500_s17 }
0x1396   :  { %v3285_v42 = vpop.eup %3284 }
0x1397   :  { %v1423_v43 = vadd.f32 1.0, %v3285_v42 }
0x1399   :  { %3286 = vrcp.f32 %v1423_v43 }
0x13a6   :  { %v3287_v44 = vpop.eup %3286 }
0x13a7   :  { %v1427_v46 = vmul.f32 %v3287_v44, %v1332_v15 }
0x1407   :  { %v1430_v45 = vpop.permute.xlu1 %1429 }
0x1408   :  { %v1432_v21 = vmul.f32 %v3287_v44, %v1430_v45 }
0x140a   :  { %1434 = vrot.lane.b32.xlu0 %v1432_v21, %s3502_s18 }
0x147c   :  { %v1435_v47 = vpop.permute.xlu0 %1434 }
0x147d   :  { %v3885_v16 = vadd.f32 %v1435_v47, %v1427_v46 }
0x147f   :  { %3288 = vtanh.f32 %v3885_v16 }
0x148c   :  { %v3289_v28 = vpop.eup %3288 }
0x148d   :  { %1440 = vrot.lane.b32.xlu1 %v3289_v28, %s3500_s17 }
0x14ff   :  { %v1441_v52 = vpop.permute.xlu1 %1440 }
0x1500   :  { %v1443_v53 = vmul.f32 %v3287_v44, %v1441_v52 }
0x1502   :  { %1445 = vrot.lane.b32.xlu0 %v1443_v53, %s3502_s18 }
0x1506   :  { %1799 = vrot.lane.b32.xlu0 %v3746_v14, %s3500_s17 }
0x1574   :  { %v1446_v54 = vpop.permute.xlu0 %1445 }
0x1575   :  { %1449 = vst.msk [vmem:[#allocation2 + $0x30] sm:$0xff] %vm223_vm4, %v1446_v54  ;;  %3083 = vmatmul.mubr.msk.f32.vlgmr.msra.gmra.mxu1 %vm223_vm4, %v1446_v54 }
0x1576   :  { %3106 = vmatpush3.msra.mxu1 %v3889_v48  ;;  %3113 = vmatprep.mubr.msk.f32.mxu1 %vm3499_vm0, %v3498_v0 }
0x1577   :  { %3107 = vmatprep.subr.mxu1 %v3498_v0 }
0x1578   :  { %3108 = vmatpush3.msra.mxu1 %v3892_v49  ;;  %v1800_v8 = vpop.permute.xlu0 %1799 }
0x1579   :  { %3109 = vmatprep.subr.mxu1 %v3498_v0 }
0x157a   :  { %3110 = vmatpush3.msra.mxu1 %v3896_v50 }
0x157b   :  { %3111 = vmatprep.subr.mxu1 %v3498_v0 }
0x157c   :  { %3112 = vmatpush3.msra.mxu1 %v3900_v51  ;;  %v1566_v14 = vld [vmem:[#allocation2 + $0x30] sm:$0xff] }
0x157d   :  { %3114 = vmatmul.mubr.msk.f32.vlgmr.msra.gmra.mxu1 %vm223_vm4, %v3784_v40  ;;  %3102 = vmatprep.mubr.msk.f32.mxu0 %vm223_vm4, %v1566_v14  ;;  %v3933_v40 = vpop.f32.mrf.mxu0 }
0x157e   :  { %3116 = vmatprep.subr.mxu1 %v3498_v0  ;;  %3124 = vmatprep.mubr.msk.f32.mxu1 %vm3499_vm0, %v3498_v0  ;;  %v1677_v33 = vadd.f32 %v3933_v40, %v3939_v59 }
0x157f   :  { %3117 = vmatpush3.msra.mxu1 %v3889_v48  ;;  %v1671_v58 = vpop.f32.mrf.mxu0 }
0x1580   :  { %3118 = vmatprep.subr.mxu1 %v3498_v0  ;;  %v1672_v60 = vadd.f32 %v3939_v59, %v1671_v58 }
0x1581   :  { %3119 = vmatpush3.msra.mxu1 %v3892_v49  ;;  %v3098_v14 = vpop.f32.mrf.mxu0 }
0x1582   :  { %3120 = vmatprep.subr.mxu1 %v3498_v0 }
0x1583   :  { %3121 = vmatpush3.msra.mxu1 %v3896_v50  ;;  %v1681_v40 = vpop.f32.mrf.mxu0 }
0x1584   :  { %3122 = vmatprep.subr.mxu1 %v3498_v0 }
0x1585   :  { %3123 = vmatpush3.msra.mxu1 %v3900_v51 }
0x1586   :  { %3138 = vmatprep.subr.mxu1 %v3498_v0 }
0x1635   :  { %v1520_v55 = vpop.f32.mrf.mxu1 }
0x1636   :  { %v1524_v56 = vadd.f32 %v1520_v55, %v3776_v27  ;;  %v3985_v55 = vpop.f32.mrf.mxu0 }
0x1637   :  { %v3084_v57 = vpop.f32.mrf.mxu1 }
0x1638   :  { %v2751_v11 = vmul.f32 -1.442695, %v1524_v56 }
0x163d   :  { %v1787_v61 = vpop.f32.mrf.mxu1 }
0x163e   :  { %v1791_v25 = vadd.f32 %v1787_v61, %v1672_v60  ;;  %v1682_v60 = vadd.f32 %v3939_v59, %v1681_v40 }
0x163f   :  { %v3115_v62 = vpop.f32.mrf.mxu1 }
0x1640   :  { %3290 = vtanh.f32 %v1791_v25  ;;  %v2763_v2 = vmul.f32 -1.442695, %v1791_v25 }
0x1642   :  { %3292 = vpow2.f32 %v2763_v2 }
0x164d   :  { %v3291_v63 = vpop.eup %3290 }
0x164e   :  { %1804 = vrot.lane.b32.xlu1 %v3291_v63, %s3500_s17 }
0x164f   :  { %v3293_v3 = vpop.eup %3292 }
0x1650   :  { %v1795_v27 = vadd.f32 1.0, %v3293_v3 }
0x1652   :  { %3294 = vrcp.f32 %v1795_v27 }
0x165f   :  { %v3295_v1 = vpop.eup %3294 }
0x1660   :  { %v1802_v5 = vmul.f32 %v3295_v1, %v1800_v8 }
0x16c0   :  { %v1805_v4 = vpop.permute.xlu1 %1804 }
0x16c1   :  { %v1807_v7 = vmul.f32 %v3295_v1, %v1805_v4 }
0x16c3   :  { %1809 = vrot.lane.b32.xlu1 %v1807_v7, %s3502_s18 }
0x1735   :  { %v1810_v9 = vpop.permute.xlu1 %1809 }
0x1736   :  { %v1812_v6 = vadd.f32 %v1810_v9, %v1802_v5 }
0x1738   :  { %3296 = vtanh.f32 %v1812_v6 }
0x1739   :  { %3298 = vtanh.f32 %v1524_v56  ;;  %v3987_v56 = vpop.f32.mrf.mxu0 }
0x173a   :  { %3300 = vpow2.f32 %v2751_v11 }
0x1745   :  { %v3297_v10 = vpop.eup %3296 }
0x1746   :  { %1815 = vrot.lane.b32.xlu0 %v3297_v10, %s3500_s17  ;;  %v3299_v12 = vpop.eup %3298 }
0x1747   :  { %v3301_v13 = vpop.eup %3300 }
0x1748   :  { %v1528_v15 = vadd.f32 1.0, %v3301_v13  ;;  %v1687_v13 = vadd.f32 %v3098_v14, %v3939_v59 }
0x174a   :  { %1534 = vrot.lane.b32.xlu0 %v3299_v12, %s3500_s17  ;;  %3302 = vrcp.f32 %v1528_v15 }
0x1757   :  { %v3303_v18 = vpop.eup %3302 }
0x1758   :  { %v1532_v24 = vmul.f32 %v3303_v18, %v3885_v16 }
0x17b8   :  { %v1816_v23 = vpop.permute.xlu0 %1815 }
0x17b9   :  { %v1818_v17 = vmul.f32 %v3295_v1, %v1816_v23 }
0x17bb   :  { %1820 = vrot.lane.b32.xlu1 %v1818_v17, %s3502_s18 }
0x17bc   :  { %v1535_v19 = vpop.permute.xlu0 %1534 }
0x17bd   :  { %v1537_v20 = vmul.f32 %v3303_v18, %v1535_v19 }
0x17bf   :  { %1539 = vrot.lane.b32.xlu0 %v1537_v20, %s3502_s18 }
0x182d   :  { %v1821_v22 = vpop.permute.xlu1 %1820 }
0x182e   :  { %1823 = vst.msk [vmem:[#allocation2] sm:$0xff] %vm223_vm4, %v1821_v22  ;;  %3125 = vmatmul.mubr.msk.f32.vlgmr.msra.gmra.mxu1 %vm223_vm4, %v1821_v22 }
0x182f   :  { %3139 = vmatpush3.msra.mxu1 %v3889_v48  ;;  %3146 = vmatprep.mubr.msk.f32.mxu1 %vm3499_vm0, %v3498_v0 }
0x1830   :  { %3140 = vmatprep.subr.mxu1 %v3498_v0 }
0x1831   :  { %v1540_v26 = vpop.permute.xlu0 %1539  ;;  %3141 = vmatpush3.msra.mxu1 %v3892_v49 }
0x1832   :  { %v1542_v29 = vadd.f32 %v1540_v26, %v1532_v24  ;;  %3142 = vmatprep.subr.mxu1 %v3498_v0 }
0x1833   :  { %3143 = vmatpush3.msra.mxu1 %v3896_v50 }
0x1834   :  { %3304 = vtanh.f32 %v1542_v29  ;;  %3144 = vmatprep.subr.mxu1 %v3498_v0 }
0x1835   :  { %3145 = vmatpush3.msra.mxu1 %v3900_v51 }
0x1836   :  { %3160 = vmatprep.subr.mxu1 %v3498_v0 }
0x1841   :  { %v3305_v30 = vpop.eup %3304 }
0x1842   :  { %1545 = vrot.lane.b32.xlu0 %v3305_v30, %s3500_s17 }
0x18b4   :  { %v1546_v31 = vpop.permute.xlu0 %1545 }
0x18b5   :  { %v1548_v32 = vmul.f32 %v3303_v18, %v1546_v31 }
0x18b7   :  { %1550 = vrot.lane.b32.xlu0 %v1548_v32, %s3502_s18 }
0x18ee   :  { %v1893_v34 = vpop.f32.mrf.mxu1 }
0x18ef   :  { %v1897_v35 = vadd.f32 %v1893_v34, %v1677_v33 }
0x18f0   :  { %v3126_v36 = vpop.f32.mrf.mxu1 }
0x18f1   :  { %3306 = vtanh.f32 %v1897_v35  ;;  %v2765_v41 = vmul.f32 -1.442695, %v1897_v35 }
0x18f3   :  { %3308 = vpow2.f32 %v2765_v41 }
0x18fe   :  { %v3307_v37 = vpop.eup %3306 }
0x18ff   :  { %1907 = vrot.lane.b32.xlu1 %v3307_v37, %s3500_s17  ;;  %v1692_v37 = vadd.f32 %v3939_v59, %v3987_v56  ;;  %v1697_v56 = vadd.f32 %v3985_v55, %v3939_v59 }
0x1900   :  { %v3309_v42 = vpop.eup %3308 }
0x1901   :  { %v1901_v43 = vadd.f32 1.0, %v3309_v42 }
0x1903   :  { %3310 = vrcp.f32 %v1901_v43 }
0x1910   :  { %v3311_v44 = vpop.eup %3310 }
0x1911   :  { %v1905_v46 = vmul.f32 %v3311_v44, %v1812_v6 }
0x1929   :  { %v1551_v38 = vpop.permute.xlu0 %1550 }
0x192a   :  { %1554 = vst.msk [vmem:[#allocation2 + $0x38] sm:$0xff] %vm223_vm4, %v1551_v38 }
0x1931   :  { %v1567_v39 = vld [vmem:[#allocation2 + $0x38] sm:$0xff] }
0x1932   :  { %3103 = vmatmul.mubr.msk.f32.gmra.mxu0 %vm223_vm4, %v1567_v39 }
0x1933   :  { %3135 = vmatprep.mubr.msk.f32.mxu0 %vm3499_vm0, %v3498_v0 }
0x1971   :  { %v1908_v45 = vpop.permute.xlu1 %1907 }
0x1972   :  { %v1910_v21 = vmul.f32 %v3311_v44, %v1908_v45 }
0x1974   :  { %1912 = vrot.lane.b32.xlu1 %v1910_v21, %s3502_s18 }
0x19e6   :  { %v1913_v47 = vpop.permute.xlu1 %1912 }
0x19e7   :  { %v1915_v16 = vadd.f32 %v1913_v47, %v1905_v46 }
0x19e9   :  { %3312 = vtanh.f32 %v1915_v16 }
0x19f2   :  { %v3989_v57 = vpop.f32.mrf.mxu0 }
0x19f4   :  { %v3991_v58 = vpop.f32.mrf.mxu0 }
0x19f6   :  { %v3313_v28 = vpop.eup %3312 }
0x19f7   :  { %1918 = vrot.lane.b32.xlu1 %v3313_v28, %s3500_s17 }
0x1a69   :  { %v1919_v52 = vpop.permute.xlu1 %1918 }
0x1a6a   :  { %v1921_v53 = vmul.f32 %v3311_v44, %v1919_v52 }
0x1a6c   :  { %1923 = vrot.lane.b32.xlu1 %v1921_v53, %s3502_s18 }
0x1ade   :  { %v1924_v54 = vpop.permute.xlu1 %1923 }
0x1adf   :  { %1926 = vst.msk [vmem:[#allocation2 + $0x8] sm:$0xff] %vm223_vm4, %v1924_v54  ;;  %3136 = vmatmul.mubr.msk.f32.vlgmr.msra.gmra.mxu0 %vm223_vm4, %v1924_v54 }
0x1ae0   :  { %3150 = vmatpush3.msra.mxu0 %v3889_v48  ;;  %3157 = vmatprep.mubr.msk.f32.mxu0 %vm3499_vm0, %v3498_v0 }
0x1ae1   :  { %3151 = vmatprep.subr.mxu0 %v3498_v0 }
0x1ae2   :  { %3152 = vmatpush3.msra.mxu0 %v3892_v49 }
0x1ae3   :  { %3153 = vmatprep.subr.mxu0 %v3498_v0 }
0x1ae4   :  { %3154 = vmatpush3.msra.mxu0 %v3896_v50 }
0x1ae5   :  { %3155 = vmatprep.subr.mxu0 %v3498_v0 }
0x1ae6   :  { %3156 = vmatpush3.msra.mxu0 %v3900_v51 }
0x1ae7   :  { %3171 = vmatprep.subr.mxu0 %v3498_v0 }
0x1b9f   :  { %v1996_v61 = vpop.f32.mrf.mxu0 }
0x1ba0   :  { %v2000_v25 = vadd.f32 %v1996_v61, %v1682_v60 }
0x1ba1   :  { %v3137_v62 = vpop.f32.mrf.mxu0 }
0x1ba2   :  { %3314 = vtanh.f32 %v2000_v25  ;;  %v2767_v2 = vmul.f32 -1.442695, %v2000_v25 }
0x1ba4   :  { %3316 = vpow2.f32 %v2767_v2 }
0x1baf   :  { %v3315_v63 = vpop.eup %3314 }
0x1bb0   :  { %2010 = vrot.lane.b32.xlu0 %v3315_v63, %s3500_s17 }
0x1bb1   :  { %v3317_v3 = vpop.eup %3316 }
0x1bb2   :  { %v2004_v27 = vadd.f32 1.0, %v3317_v3 }
0x1bb4   :  { %3318 = vrcp.f32 %v2004_v27  ;;  %v2556_v27 = vld [vmem:[%s4148_s13 + $0x18] sm:$0xff] }
0x1bc1   :  { %v3319_v1 = vpop.eup %3318 }
0x1bc2   :  { %v2008_v8 = vmul.f32 %v3319_v1, %v1915_v16 }
0x1c22   :  { %v2011_v4 = vpop.permute.xlu0 %2010 }
0x1c23   :  { %v2013_v7 = vmul.f32 %v3319_v1, %v2011_v4 }
0x1c25   :  { %2015 = vrot.lane.b32.xlu1 %v2013_v7, %s3502_s18 }
0x1c97   :  { %v2016_v5 = vpop.permute.xlu1 %2015 }
0x1c98   :  { %v2018_v9 = vadd.f32 %v2016_v5, %v2008_v8  ;;  %v2555_v5 = vld [vmem:[%s4148_s13 + $0x10] sm:$0xff] }
0x1c9a   :  { %3320 = vtanh.f32 %v2018_v9 }
0x1ca7   :  { %v3321_v6 = vpop.eup %3320 }
0x1ca8   :  { %2021 = vrot.lane.b32.xlu0 %v3321_v6, %s3500_s17  ;;  %v2554_v6 = vld [vmem:[%s4148_s13 + $0x8] sm:$0xff] }
0x1d1a   :  { %v2022_v10 = vpop.permute.xlu0 %2021 }
0x1d1b   :  { %v2024_v12 = vmul.f32 %v3319_v1, %v2022_v10  ;;  %v2553_v10 = vld [vmem:[%s4148_s13] sm:$0xff] }
0x1d1d   :  { %2026 = vrot.lane.b32.xlu1 %v2024_v12, %s3502_s18  ;;  %v2546_v12 = vld [vmem:[#allocation2 + $0x8] sm:$0xff] }
0x1d8f   :  { %v2027_v11 = vpop.permute.xlu1 %2026 }
0x1d90   :  { %2029 = vst.msk [vmem:[#allocation2 + $0x10] sm:$0xff] %vm223_vm4, %v2027_v11  ;;  %3147 = vmatmul.mubr.msk.f32.vlgmr.msra.gmra.mxu1 %vm223_vm4, %v2027_v11 }
0x1d91   :  { %3161 = vmatpush3.msra.mxu1 %v3889_v48  ;;  %3168 = vmatprep.mubr.msk.f32.mxu1 %vm3499_vm0, %v3498_v0 }
0x1d92   :  { %3162 = vmatprep.subr.mxu1 %v3498_v0 }
0x1d93   :  { %3163 = vmatpush3.msra.mxu1 %v3892_v49 }
0x1d94   :  { %3164 = vmatprep.subr.mxu1 %v3498_v0 }
0x1d95   :  { %3165 = vmatpush3.msra.mxu1 %v3896_v50 }
0x1d96   :  { %3166 = vmatprep.subr.mxu1 %v3498_v0 }
0x1d97   :  { %3167 = vmatpush3.msra.mxu1 %v3900_v51  ;;  %v2547_v11 = vld [vmem:[#allocation2 + $0x10] sm:$0xff] }
0x1d98   :  { %3182 = vmatprep.subr.mxu1 %v3498_v0 }
0x1e50   :  { %v2099_v15 = vpop.f32.mrf.mxu1 }
0x1e51   :  { %v2103_v23 = vadd.f32 %v2099_v15, %v1687_v13 }
0x1e52   :  { %v3148_v17 = vpop.f32.mrf.mxu1 }
0x1e53   :  { %3322 = vtanh.f32 %v2103_v23  ;;  %v2769_v19 = vmul.f32 -1.442695, %v2103_v23  ;;  %v1702_v17 = vadd.f32 %v3939_v59, %v3991_v58 }
0x1e55   :  { %3324 = vpow2.f32 %v2769_v19 }
0x1e60   :  { %v3323_v18 = vpop.eup %3322 }
0x1e61   :  { %2113 = vrot.lane.b32.xlu0 %v3323_v18, %s3500_s17 }
0x1e62   :  { %v3325_v20 = vpop.eup %3324 }
0x1e63   :  { %v2107_v22 = vadd.f32 1.0, %v3325_v20 }
0x1e65   :  { %3326 = vrcp.f32 %v2107_v22  ;;  %v4077_v22 = vld [vmem:[%s4149_s14] ss:$0 sm:$0xff] }
0x1e72   :  { %v3327_v24 = vpop.eup %3326 }
0x1e73   :  { %v2111_v30 = vmul.f32 %v3327_v24, %v2018_v9  ;;  %v2545_v9 = vld [vmem:[#allocation2] sm:$0xff] }
0x1ed3   :  { %v2114_v26 = vpop.permute.xlu0 %2113 }
0x1ed4   :  { %v2116_v29 = vmul.f32 %v3327_v24, %v2114_v26 }
0x1ed6   :  { %2118 = vrot.lane.b32.xlu1 %v2116_v29, %s3502_s18 }
0x1f48   :  { %v2119_v31 = vpop.permute.xlu1 %2118 }
0x1f49   :  { %v2121_v32 = vadd.f32 %v2119_v31, %v2111_v30 }
0x1f4b   :  { %3328 = vtanh.f32 %v2121_v32 }
0x1f58   :  { %v3329_v33 = vpop.eup %3328 }
0x1f59   :  { %2124 = vrot.lane.b32.xlu0 %v3329_v33, %s3500_s17 }
0x1fcb   :  { %v2125_v34 = vpop.permute.xlu0 %2124 }
0x1fcc   :  { %v2127_v35 = vmul.f32 %v3327_v24, %v2125_v34 }
0x1fce   :  { %2129 = vrot.lane.b32.xlu1 %v2127_v35, %s3502_s18 }
0x2040   :  { %v2130_v36 = vpop.permute.xlu1 %2129 }
0x2041   :  { %2132 = vst.msk [vmem:[#allocation2 + $0x18] sm:$0xff] %vm223_vm4, %v2130_v36  ;;  %3158 = vmatmul.mubr.msk.f32.vlgmr.msra.gmra.mxu0 %vm223_vm4, %v2130_v36 }
0x2042   :  { %3172 = vmatpush3.msra.mxu0 %v3889_v48  ;;  %3179 = vmatprep.mubr.msk.f32.mxu0 %vm3499_vm0, %v3498_v0 }
0x2043   :  { %3173 = vmatprep.subr.mxu0 %v3498_v0 }
0x2044   :  { %3174 = vmatpush3.msra.mxu0 %v3892_v49 }
0x2045   :  { %3175 = vmatprep.subr.mxu0 %v3498_v0 }
0x2046   :  { %3176 = vmatpush3.msra.mxu0 %v3896_v50 }
0x2047   :  { %3177 = vmatprep.subr.mxu0 %v3498_v0 }
0x2048   :  { %3178 = vmatpush3.msra.mxu0 %v3900_v51  ;;  %v2548_v13 = vld [vmem:[#allocation2 + $0x18] sm:$0xff] }
0x2049   :  { %3193 = vmatprep.subr.mxu0 %v2556_v27 }
0x2101   :  { %v2202_v38 = vpop.f32.mrf.mxu0 }
0x2102   :  { %v2206_v39 = vadd.f32 %v2202_v38, %v1692_v37 }
0x2103   :  { %v3159_v41 = vpop.f32.mrf.mxu0 }
0x2104   :  { %3330 = vtanh.f32 %v2206_v39  ;;  %v2771_v43 = vmul.f32 -1.442695, %v2206_v39 }
0x2106   :  { %3332 = vpow2.f32 %v2771_v43 }
0x2111   :  { %v3331_v42 = vpop.eup %3330 }
0x2112   :  { %2216 = vrot.lane.b32.xlu0 %v3331_v42, %s3500_s17 }
0x2113   :  { %v3333_v44 = vpop.eup %3332 }
0x2114   :  { %v2210_v45 = vadd.f32 1.0, %v3333_v44 }
0x2116   :  { %3334 = vrcp.f32 %v2210_v45 }
0x2123   :  { %v3335_v21 = vpop.eup %3334 }
0x2124   :  { %v2214_v16 = vmul.f32 %v3335_v21, %v2121_v32 }
0x2184   :  { %v2217_v46 = vpop.permute.xlu0 %2216 }
0x2185   :  { %v2219_v47 = vmul.f32 %v3335_v21, %v2217_v46 }
0x2187   :  { %2221 = vrot.lane.b32.xlu1 %v2219_v47, %s3502_s18 }
0x21f9   :  { %v2222_v28 = vpop.permute.xlu1 %2221 }
0x21fa   :  { %v2224_v52 = vadd.f32 %v2222_v28, %v2214_v16 }
0x21fc   :  { %3336 = vtanh.f32 %v2224_v52 }
0x2209   :  { %v3337_v53 = vpop.eup %3336 }
0x220a   :  { %2227 = vrot.lane.b32.xlu0 %v3337_v53, %s3500_s17 }
0x227c   :  { %v2228_v54 = vpop.permute.xlu0 %2227 }
0x227d   :  { %v2230_v14 = vmul.f32 %v3335_v21, %v2228_v54 }
0x227f   :  { %2232 = vrot.lane.b32.xlu1 %v2230_v14, %s3502_s18  ;;  %v1707_v14 = vadd.f32 %v3989_v57, %v3939_v59 }
0x22f1   :  { %v2233_v40 = vpop.permute.xlu1 %2232 }
0x22f2   :  { %2235 = vst.msk [vmem:[#allocation2 + $0x20] sm:$0xff] %vm223_vm4, %v2233_v40  ;;  %3169 = vmatmul.mubr.msk.f32.vlgmr.msra.gmra.mxu1 %vm223_vm4, %v2233_v40 }
0x22f3   :  { %3183 = vmatpush3.msra.mxu1 %v3889_v48  ;;  %3190 = vmatprep.mubr.msk.f32.mxu1 %vm3499_vm0, %v3498_v0 }
0x22f4   :  { %3184 = vmatprep.subr.mxu1 %v3498_v0 }
0x22f5   :  { %3185 = vmatpush3.msra.mxu1 %v3892_v49 }
0x22f6   :  { %3186 = vmatprep.subr.mxu1 %v3498_v0 }
0x22f7   :  { %3187 = vmatpush3.msra.mxu1 %v3896_v50 }
0x22f8   :  { %3188 = vmatprep.subr.mxu1 %v3498_v0 }
0x22f9   :  { %3189 = vmatpush3.msra.mxu1 %v3900_v51  ;;  %v2549_v15 = vld [vmem:[#allocation2 + $0x20] sm:$0xff] }
0x23b2   :  { %v2305_v60 = vpop.f32.mrf.mxu1 }
0x23b3   :  { %v2309_v48 = vadd.f32 %v2305_v60, %v1697_v56 }
0x23b4   :  { %v3170_v61 = vpop.f32.mrf.mxu1 }
0x23b5   :  { %3338 = vtanh.f32 %v2309_v48  ;;  %v2773_v62 = vmul.f32 -1.442695, %v2309_v48 }
0x23b7   :  { %3340 = vpow2.f32 %v2773_v62 }
0x23c2   :  { %v3339_v25 = vpop.eup %3338 }
0x23c3   :  { %2319 = vrot.lane.b32.xlu0 %v3339_v25, %s3500_s17 }
0x23c4   :  { %v3341_v49 = vpop.eup %3340 }
0x23c5   :  { %v2313_v63 = vadd.f32 1.0, %v3341_v49 }
0x23c7   :  { %3342 = vrcp.f32 %v2313_v63 }
0x23d4   :  { %v3343_v50 = vpop.eup %3342 }
0x23d5   :  { %v2317_v51 = vmul.f32 %v3343_v50, %v2224_v52 }
0x2435   :  { %v2320_v2 = vpop.permute.xlu0 %2319 }
0x2436   :  { %v2322_v0 = vmul.f32 %v3343_v50, %v2320_v2 }
0x2438   :  { %2324 = vrot.lane.b32.xlu1 %v2322_v0, %s3502_s18 }
0x24aa   :  { %v2325_v3 = vpop.permute.xlu1 %2324 }
0x24ab   :  { %v4047_v55 = vadd.f32 %v2325_v3, %v2317_v51 }
0x24ad   :  { %3344 = vtanh.f32 %v4047_v55 }
0x24ba   :  { %v3345_v1 = vpop.eup %3344 }
0x24bb   :  { %2330 = vrot.lane.b32.xlu0 %v3345_v1, %s3500_s17 }
0x252d   :  { %v2331_v4 = vpop.permute.xlu0 %2330 }
0x252e   :  { %v2333_v7 = vmul.f32 %v3343_v50, %v2331_v4 }
0x2530   :  { %2335 = vrot.lane.b32.xlu1 %v2333_v7, %s3502_s18 }
0x25a2   :  { %v2336_v8 = vpop.permute.xlu1 %2335 }
0x25a3   :  { %2338 = vst.msk [vmem:[#allocation2 + $0x28] sm:$0xff] %vm223_vm4, %v2336_v8  ;;  %3180 = vmatmul.mubr.msk.f32.vlgmr.msra.gmra.mxu0 %vm223_vm4, %v2336_v8 }
0x25a4   :  { %3194 = vmatpush3.msra.mxu0 %v2556_v27  ;;  %3201 = vmatprep.mubr.msk.f32.mxu0 %vm223_vm4, %v2545_v9 }
0x25a5   :  { %3195 = vmatprep.subr.mxu0 %v2555_v5 }
0x25a6   :  { %3196 = vmatpush3.msra.mxu0 %v2555_v5 }
0x25a7   :  { %3197 = vmatprep.subr.mxu0 %v2554_v6 }
0x25a8   :  { %3198 = vmatpush3.msra.mxu0 %v2554_v6 }
0x25a9   :  { %3199 = vmatprep.subr.mxu0 %v2553_v10 }
0x25aa   :  { %3200 = vmatpush3.msra.mxu0 %v2553_v10  ;;  %v2550_v23 = vld [vmem:[#allocation2 + $0x28] sm:$0xff] }
0x25ab   :  { %3202 = vmatmul.mubr.msk.f32.vlgmr.msra.gmra.mxu0 %vm223_vm4, %v2546_v12 }
0x25ac   :  { %3204 = vmatprep.mubr.msk.f32.mxu0 %vm223_vm4, %v2547_v11 }
0x25af   :  { %3205 = vmatmul.mubr.msk.f32.gmra.mxu0 %vm223_vm4, %v2548_v13 }
0x25b0   :  { %3207 = vmatprep.mubr.msk.f32.mxu0 %vm223_vm4, %v2549_v15 }
0x25b3   :  { %3208 = vmatmul.mubr.msk.f32.gmra.mxu0 %vm223_vm4, %v2550_v23 }
0x2663   :  { %v2408_v18 = vpop.f32.mrf.mxu0 }
0x2664   :  { %v2412_v19 = vadd.f32 %v2408_v18, %v1702_v17 }
0x2665   :  { %v3181_v20 = vpop.f32.mrf.mxu0 }
0x2666   :  { %3346 = vtanh.f32 %v2412_v19  ;;  %v2775_v39 = vmul.f32 -1.442695, %v2412_v19 }
0x2668   :  { %3348 = vpow2.f32 %v2775_v39 }
0x266b   :  { %v3203_v24 = vpop.f32.mrf.mxu0 }
0x266c   :  { %v2660_v26 = vadd.f32 %v3203_v24, %v4077_v22 }
0x266d   :  { %v2654_v29 = vpop.f32.mrf.mxu0 }
0x266e   :  { %2695 = vst.msk [vmem:[%s4150_s15 + $0x8] sm:$0xff] %vm2693_vm7, %v2660_v26  ;;  %v2655_v58 = vadd.f32 %v4077_v22, %v2654_v29 }
0x266f   :  { %v3206_v30 = vpop.f32.mrf.mxu0 }
0x2670   :  { %2694 = vst.msk [vmem:[%s4150_s15] sm:$0xff] %vm2693_vm7, %v2655_v58  ;;  %v2670_v31 = vadd.f32 %v3206_v30, %v4077_v22 }
0x2671   :  { %v2664_v32 = vpop.f32.mrf.mxu0 }
0x2672   :  { %2697 = vst.msk [vmem:[%s4150_s15 + $0x18] sm:$0xff] %vm2693_vm7, %v2670_v31  ;;  %v2665_v33 = vadd.f32 %v4077_v22, %v2664_v32 }
0x2673   :  { %v3347_v34 = vpop.eup %3346  ;;  %v3209_v35 = vpop.f32.mrf.mxu0 }
0x2674   :  { %2696 = vst.msk [vmem:[%s4150_s15 + $0x10] sm:$0xff] %vm2693_vm7, %v2665_v33  ;;  %v2680_v36 = vadd.f32 %v3209_v35, %v4077_v22  ;;  %2422 = vrot.lane.b32.xlu0 %v3347_v34, %s3500_s17 }
0x2675   :  { %v2674_v37 = vpop.f32.mrf.mxu0  ;;  %v3349_v41 = vpop.eup %3348 }
0x2676   :  { %2699 = vst.msk [vmem:[%s4150_s15 + $0x28] sm:$0xff] %vm2693_vm7, %v2680_v36  ;;  %v2675_v38 = vadd.f32 %v4077_v22, %v2674_v37  ;;  %v2416_v42 = vadd.f32 1.0, %v3349_v41 }
0x2678   :  { %2698 = vst.msk [vmem:[%s4150_s15 + $0x20] sm:$0xff] %vm2693_vm7, %v2675_v38  ;;  %3350 = vrcp.f32 %v2416_v42 }
0x2685   :  { %v3351_v43 = vpop.eup %3350 }
0x2686   :  { %v2420_v21 = vmul.f32 %v3351_v43, %v4047_v55 }
0x26e6   :  { %v2423_v44 = vpop.permute.xlu0 %2422 }
0x26e7   :  { %v2425_v45 = vmul.f32 %v3351_v43, %v2423_v44 }
0x26e9   :  { %2427 = vrot.lane.b32.xlu1 %v2425_v45, %s3502_s18 }
0x275b   :  { %v2428_v46 = vpop.permute.xlu1 %2427 }
0x275c   :  { %v2430_v47 = vadd.f32 %v2428_v46, %v2420_v21 }
0x275e   :  { %3352 = vtanh.f32 %v2430_v47 }
0x276b   :  { %v3353_v16 = vpop.eup %3352 }
0x276c   :  { %2433 = vrot.lane.b32.xlu0 %v3353_v16, %s3500_s17 }
0x27de   :  { %v2434_v28 = vpop.permute.xlu0 %2433 }
0x27df   :  { %v2436_v52 = vmul.f32 %v3351_v43, %v2434_v28 }
0x27e1   :  { %2438 = vrot.lane.b32.xlu1 %v2436_v52, %s3502_s18 }
0x2853   :  { %v2439_v53 = vpop.permute.xlu1 %2438 }
0x2854   :  { %2441 = vst.msk [vmem:[#allocation2 + $0x30] sm:$0xff] %vm223_vm4, %v2439_v53  ;;  %3191 = vmatmul.mubr.msk.f32.vlgmr.msra.gmra.mxu1 %vm223_vm4, %v2439_v53 }
0x285b   :  { %v2551_v54 = vld [vmem:[#allocation2 + $0x30] sm:$0xff] }
0x285c   :  { %3210 = vmatprep.mubr.msk.f32.mxu0 %vm223_vm4, %v2551_v54 }
0x2914   :  { %v2511_v40 = vpop.f32.mrf.mxu1 }
0x2915   :  { %v2515_v56 = vadd.f32 %v2511_v40, %v1707_v14 }
0x2916   :  { %v3192_v60 = vpop.f32.mrf.mxu1 }
0x2917   :  { %3354 = vtanh.f32 %v2515_v56  ;;  %v2777_v61 = vmul.f32 -1.442695, %v2515_v56 }
0x2919   :  { %3356 = vpow2.f32 %v2777_v61 }
0x2924   :  { %v3355_v48 = vpop.eup %3354 }
0x2925   :  { %2525 = vrot.lane.b32.xlu0 %v3355_v48, %s3500_s17 }
0x2926   :  { %v3357_v25 = vpop.eup %3356 }
0x2927   :  { %v2519_v62 = vadd.f32 1.0, %v3357_v25 }
0x2929   :  { %3358 = vrcp.f32 %v2519_v62 }
0x2936   :  { %v3359_v49 = vpop.eup %3358 }
0x2937   :  { %v2523_v2 = vmul.f32 %v3359_v49, %v2430_v47 }
0x2997   :  { %v2526_v63 = vpop.permute.xlu0 %2525 }
0x2998   :  { %v2528_v50 = vmul.f32 %v3359_v49, %v2526_v63 }
0x299a   :  { %2530 = vrot.lane.b32.xlu1 %v2528_v50, %s3502_s18 }
0x2a0c   :  { %v2531_v0 = vpop.permute.xlu1 %2530 }
0x2a0d   :  { %v2533_v59 = vadd.f32 %v2531_v0, %v2523_v2 }
0x2a0f   :  { %3360 = vtanh.f32 %v2533_v59 }
0x2a1c   :  { %v3361_v57 = vpop.eup %3360 }
0x2a1d   :  { %2536 = vrot.lane.b32.xlu0 %v3361_v57, %s3500_s17 }
0x2a8f   :  { %v2537_v51 = vpop.permute.xlu0 %2536 }
0x2a90   :  { %v2539_v3 = vmul.f32 %v3359_v49, %v2537_v51 }
0x2a92   :  { %2541 = vrot.lane.b32.xlu1 %v2539_v3, %s3502_s18 }
0x2b04   :  { %v2542_v55 = vpop.permute.xlu1 %2541 }
0x2b05   :  { %2544 = vst.msk [vmem:[#allocation2 + $0x38] sm:$0xff] %vm223_vm4, %v2542_v55 }
0x2b0c   :  { %v2552_v27 = vld [vmem:[#allocation2 + $0x38] sm:$0xff] }
0x2b0d   :  { %3211 = vmatmul.mubr.msk.f32.gmra.mxu0 %vm223_vm4, %v2552_v27 }
0x2bcd   :  { %v3212_v1 = vpop.f32.mrf.mxu0 }
0x2bce   :  { %v2690_v4 = vadd.f32 %v3212_v1, %v4077_v22 }
0x2bcf   :  { %v2684_v7 = vpop.f32.mrf.mxu0 }
0x2bd0   :  { %2701 = vst.msk [vmem:[%s4150_s15 + $0x38] sm:$0xff] %vm2693_vm7, %v2690_v4  ;;  %v2685_v8 = vadd.f32 %v4077_v22, %v2684_v7 }
0x2bd2   :  { %2700 = vst.msk [vmem:[%s4150_s15 + $0x30] sm:$0xff] %vm2693_vm7, %v2685_v8 }
0x2bd3   :  { %2706 = vsyncpa [#allocation5], 1 }
0x2bd4   :  { %2707 = vsyncpa [#allocation7], 1 }
0x2bd5   :  { %2708 = vsyncpa [#allocation10], 1 }
0x2bd6   :  { %2709 = vsyncpa [#allocation13], 1 }

</bundles_post_ra>
